<compile_context>
chip_gen: v7x
topology: tpu7x:2x2x1
jax: 0.10.0
libtpu: 0.0.40
codegen_flags: <defaults>
</compile_context>

<pallas_src>
import jax
import jax.numpy as jnp
from jax import lax
from jax.experimental import pallas as pl
from jax.experimental.pallas import tpu as pltpu

INPUT_SIZE = 5
HIDDEN = 128
BPAD = 8          # batch padded to one full sublane group


def lstm_kernel(x_ref, w_ih_ref, w_hh_ref, b_ref, w_lin_ref, b_lin_ref,
                out_ref, gx_ref):
    # x_ref:     (T*8, 5)   time-major, batch-padded input (row = t*8 + b), bf16
    # w_ih_ref:  (5, 4H)    input->gates weights, gate order [i,f,o,g], bf16
    # w_hh_ref:  (H, 4H)    hidden->gates weights, gate order [i,f,o,g], bf16
    # b_ref:     (1, 4H)    b_ih + b_hh (reordered), f32
    # w_lin_ref: (1, H)     final linear weight, f32
    # b_lin_ref: (1, 1)     final linear bias, f32
    # out_ref:   (8, 1)     padded output (rows B..7 are garbage, sliced outside)
    # gx_ref:    (T*8, 4H)  VMEM scratch for precomputed input projections
    T = x_ref.shape[0] // BPAD
    H = HIDDEN

    # ---- Phase 1: all timesteps' input projections in one MXU matmul -------
    gx_ref[...] = (
        jnp.dot(x_ref[...], w_ih_ref[...], preferred_element_type=jnp.float32)
        + b_ref[...]
    )

    # ---- Phase 2: serial recurrence, state carried in vregs ----------------
    # W_hh is read from VMEM inside the body (not hoisted) so it never pins
    # half the register file across the unrolled loop.
    def step(t, carry):
        h, c = carry
        row = pl.multiple_of(t * BPAD, BPAD)
        gx_t = gx_ref[pl.ds(row, BPAD), :]                       # (8, 4H) aligned
        gates = gx_t + jnp.dot(
            h.astype(jnp.bfloat16), w_hh_ref[...],
            preferred_element_type=jnp.float32)

        sig = jax.nn.sigmoid(gates[:, :3 * H])                   # i, f, o at once
        i_g = sig[:, 0 * H:1 * H]
        f_g = sig[:, 1 * H:2 * H]
        o_g = sig[:, 2 * H:3 * H]
        g_g = jnp.tanh(gates[:, 3 * H:4 * H])

        c_new = f_g * c + i_g * g_g
        h_new = o_g * jnp.tanh(c_new)
        return h_new, c_new

    h0 = jnp.zeros((BPAD, H), jnp.float32)
    c0 = jnp.zeros((BPAD, H), jnp.float32)
    h, _ = lax.fori_loop(0, T, step, (h0, c0), unroll=True)

    # ---- Epilogue: linear(h_n) as VPU mul + XLU lane reduction -------------
    out_ref[...] = (
        jnp.sum(h * w_lin_ref[...], axis=-1, keepdims=True) + b_lin_ref[...]
    )


def _reorder_gates(w):
    """PyTorch gate order [i, f, g, o] -> kernel order [i, f, o, g] (axis 0)."""
    i, f, g, o = jnp.split(w, 4, axis=0)
    return jnp.concatenate([i, f, o, g], axis=0)


def lstm_forward(x, w_ih, w_hh, b_ih, b_hh, w_lin, b_lin):
    """x: (B, T, 5) float32.  Returns (B, 1) float32 (== Lstm.forward output)."""
    B, T, F = x.shape
    assert F == INPUT_SIZE and B <= BPAD

    # Time-major, batch padded to 8 sublanes, flattened: row index = t*8 + b.
    x_tm = jnp.transpose(x, (1, 0, 2))                              # (T, B, F)
    x_tm = jnp.pad(x_tm, ((0, 0), (0, BPAD - B), (0, 0)))           # (T, 8, F)
    x_tm = x_tm.reshape(T * BPAD, F).astype(jnp.bfloat16)           # (T*8, F)

    # Reorder gate rows, transpose for row-major kernel matmuls, cast to bf16.
    w_ih_t = jnp.transpose(_reorder_gates(w_ih)).astype(jnp.bfloat16)   # (F, 4H)
    w_hh_t = jnp.transpose(_reorder_gates(w_hh)).astype(jnp.bfloat16)   # (H, 4H)
    b = _reorder_gates((b_ih + b_hh).reshape(4 * HIDDEN, 1))
    b = jnp.transpose(b).reshape(1, 4 * HIDDEN)                     # (1, 4H) f32
    w_lin_r = w_lin.reshape(1, HIDDEN)                              # (1, H)  f32
    b_lin_r = b_lin.reshape(1, 1)                                   # (1, 1)  f32

    vmem = pl.BlockSpec(memory_space=pltpu.MemorySpace.VMEM)
    out_pad = pl.pallas_call(
        lstm_kernel,
        out_shape=jax.ShapeDtypeStruct((BPAD, 1), jnp.float32),
        in_specs=[vmem] * 6,
        out_specs=vmem,
        scratch_shapes=[
            pltpu.VMEM((T * BPAD, 4 * HIDDEN), jnp.float32),  # precomputed gates_x
        ],
    )(x_tm, w_ih_t, w_hh_t, b, w_lin_r, b_lin_r)
    return out_pad[:B]


def lstm_reference(x, w_ih, w_hh, b_ih, b_hh, w_lin, b_lin):
    """Pure-JAX reference reproducing PyTorch nn.LSTM + nn.Linear semantics."""
    B, T, _ = x.shape
    h = jnp.zeros((B, HIDDEN), jnp.float32)
    c = jnp.zeros((B, HIDDEN), jnp.float32)
    for t in range(T):
        gates = x[:, t, :] @ w_ih.T + b_ih + h @ w_hh.T + b_hh
        i_g = jax.nn.sigmoid(gates[:, 0 * HIDDEN:1 * HIDDEN])
        f_g = jax.nn.sigmoid(gates[:, 1 * HIDDEN:2 * HIDDEN])
        g_g = jnp.tanh(gates[:, 2 * HIDDEN:3 * HIDDEN])
        o_g = jax.nn.sigmoid(gates[:, 3 * HIDDEN:4 * HIDDEN])
        c = f_g * c + i_g * g_g
        h = o_g * jnp.tanh(c)
    return h @ w_lin.T + b_lin


if __name__ == "__main__":
    key = jax.random.PRNGKey(0)
    kx, k1, k2, k3, k4, k5, k6 = jax.random.split(key, 7)

    B, T = 2, 8
    scale = 1.0 / jnp.sqrt(HIDDEN)

    x = jax.random.normal(kx, (B, T, INPUT_SIZE), jnp.float32)
    # PyTorch parameter shapes: weight_ih_l0 (4H, F), weight_hh_l0 (4H, H),
    # bias_ih_l0 (4H,), bias_hh_l0 (4H,), linear weight (1, H), linear bias (1,)
    w_ih = jax.random.uniform(k1, (4 * HIDDEN, INPUT_SIZE), jnp.float32, -scale, scale)
    w_hh = jax.random.uniform(k2, (4 * HIDDEN, HIDDEN), jnp.float32, -scale, scale)
    b_ih = jax.random.uniform(k3, (4 * HIDDEN,), jnp.float32, -scale, scale)
    b_hh = jax.random.uniform(k4, (4 * HIDDEN,), jnp.float32, -scale, scale)
    w_lin = jax.random.uniform(k5, (1, HIDDEN), jnp.float32, -scale, scale)
    b_lin = jax.random.uniform(k6, (1,), jnp.float32, -scale, scale)

    out = lstm_forward(x, w_ih, w_hh, b_ih, b_hh, w_lin, b_lin)
    out = jax.block_until_ready(out)

    ref = lstm_reference(x, w_ih, w_hh, b_ih, b_hh, w_lin, b_lin)
    assert out.shape == (B, 1), out.shape
    assert jnp.allclose(out, ref, atol=2e-2, rtol=2e-2), (out, ref)

    print("KERNEL_OK")
</pallas_src>

<mosaic_0001>
module attributes {stable_mosaic.version = 11 : i64} {
  func.func @lstm_kernel(%arg0: memref<64x5xbf16, #tpu.memory_space<vmem>>, %arg1: memref<5x512xbf16, #tpu.memory_space<vmem>>, %arg2: memref<128x512xbf16, #tpu.memory_space<vmem>>, %arg3: memref<1x512xf32, #tpu.memory_space<vmem>>, %arg4: memref<1x128xf32, #tpu.memory_space<vmem>>, %arg5: memref<1x1xf32, #tpu.memory_space<vmem>>, %arg6: memref<8x1xf32, #tpu.memory_space<vmem>>, %arg7: memref<64x512xf32, #tpu.memory_space<vmem>>) attributes {dimension_semantics = [], scalar_prefetch = 0 : i64, scratch_operands = 1 : i64, tpu.core_type = #tpu.core_type<tc>} {
    %c0 = arith.constant 0 : index
    %c0_0 = arith.constant 0 : index
    %0 = vector.load %arg0[%c0, %c0_0] : memref<64x5xbf16, #tpu.memory_space<vmem>>, vector<64x5xbf16>
    %c0_1 = arith.constant 0 : index
    %c0_2 = arith.constant 0 : index
    %1 = vector.load %arg1[%c0_1, %c0_2] : memref<5x512xbf16, #tpu.memory_space<vmem>>, vector<5x512xbf16>
    %cst = arith.constant dense<0.000000e+00> : vector<64x512xf32>
    %2 = tpu.matmul %0, %1, %cst {dimension_numbers = #tpu.dot_dimension_numbers<[1], [0], [0], [1], [0, 0, 1, 1], [], []>} : vector<64x5xbf16>, vector<5x512xbf16>, vector<64x512xf32> -> vector<64x512xf32>
    %c0_3 = arith.constant 0 : index
    %c0_4 = arith.constant 0 : index
    %3 = vector.load %arg3[%c0_3, %c0_4] : memref<1x512xf32, #tpu.memory_space<vmem>>, vector<1x512xf32>
    %4 = vector.broadcast %3 : vector<1x512xf32> to vector<64x512xf32>
    %5 = arith.addf %2, %4 : vector<64x512xf32>
    %c0_5 = arith.constant 0 : index
    %c0_6 = arith.constant 0 : index
    %6 = vector.load %arg7[%c0_5, %c0_6] : memref<64x512xf32, #tpu.memory_space<vmem>>, vector<64x512xf32>
    tpu.vector_store %arg7[%c0_5, %c0_6], %5 {strides = array<i32>} : memref<64x512xf32, #tpu.memory_space<vmem>>, vector<64x512xf32>,
    %cst_7 = arith.constant 0.000000e+00 : f32
    %7 = vector.broadcast %cst_7 : f32 to vector<8x128xf32>
    %cst_8 = arith.constant 0.000000e+00 : f32
    %8 = vector.broadcast %cst_8 : f32 to vector<8x128xf32>
    %c0_i32 = arith.constant 0 : i32
    %c8_i32 = arith.constant 8 : i32
    %9 = arith.muli %c0_i32, %c8_i32 : i32
    %10 = tpu.assume_multiple %9, 8 : i32
    %11 = arith.index_cast %10 : i32 to index
    %c0_9 = arith.constant 0 : index
    %12 = vector.load %arg7[%11, %c0_9] : memref<64x512xf32, #tpu.memory_space<vmem>>, vector<8x512xf32>
    %13 = arith.truncf %7 : vector<8x128xf32> to vector<8x128xbf16>
    %c0_10 = arith.constant 0 : index
    %c0_11 = arith.constant 0 : index
    %14 = vector.load %arg2[%c0_10, %c0_11] : memref<128x512xbf16, #tpu.memory_space<vmem>>, vector<128x512xbf16>
    %cst_12 = arith.constant dense<0.000000e+00> : vector<8x512xf32>
    %15 = tpu.matmul %13, %14, %cst_12 {dimension_numbers = #tpu.dot_dimension_numbers<[1], [0], [0], [1], [0, 0, 1, 1], [], []>} : vector<8x128xbf16>, vector<128x512xbf16>, vector<8x512xf32> -> vector<8x512xf32>
    %16 = arith.addf %12, %15 : vector<8x512xf32>
    %17 = vector.extract_strided_slice %16 {offsets = [0, 0], sizes = [8, 384], strides = [1, 1]} : vector<8x512xf32> to vector<8x384xf32>
    %18 = arith.negf %17 : vector<8x384xf32>
    %19 = math.exp %18 : vector<8x384xf32>
    %cst_13 = arith.constant 1.000000e+00 : f32
    %20 = vector.broadcast %cst_13 : f32 to vector<8x384xf32>
    %21 = arith.addf %20, %19 : vector<8x384xf32>
    %22 = arith.divf %20, %21 : vector<8x384xf32>
    %23 = vector.extract_strided_slice %22 {offsets = [0, 0], sizes = [8, 128], strides = [1, 1]} : vector<8x384xf32> to vector<8x128xf32>
    %24 = vector.extract_strided_slice %22 {offsets = [0, 128], sizes = [8, 128], strides = [1, 1]} : vector<8x384xf32> to vector<8x128xf32>
    %25 = vector.extract_strided_slice %22 {offsets = [0, 256], sizes = [8, 128], strides = [1, 1]} : vector<8x384xf32> to vector<8x128xf32>
    %26 = vector.extract_strided_slice %16 {offsets = [0, 384], sizes = [8, 128], strides = [1, 1]} : vector<8x512xf32> to vector<8x128xf32>
    %27 = math.tanh %26 : vector<8x128xf32>
    %28 = arith.mulf %24, %8 : vector<8x128xf32>
    %29 = arith.mulf %23, %27 : vector<8x128xf32>
    %30 = arith.addf %28, %29 : vector<8x128xf32>
    %31 = math.tanh %30 : vector<8x128xf32>
    %32 = arith.mulf %25, %31 : vector<8x128xf32>
    %c1_i32 = arith.constant 1 : i32
    %c8_i32_14 = arith.constant 8 : i32
    %33 = arith.muli %c1_i32, %c8_i32_14 : i32
    %34 = tpu.assume_multiple %33, 8 : i32
    %35 = arith.index_cast %34 : i32 to index
    %c0_15 = arith.constant 0 : index
    %36 = vector.load %arg7[%35, %c0_15] : memref<64x512xf32, #tpu.memory_space<vmem>>, vector<8x512xf32>
    %37 = arith.truncf %32 : vector<8x128xf32> to vector<8x128xbf16>
    %c0_16 = arith.constant 0 : index
    %c0_17 = arith.constant 0 : index
    %38 = vector.load %arg2[%c0_16, %c0_17] : memref<128x512xbf16, #tpu.memory_space<vmem>>, vector<128x512xbf16>
    %cst_18 = arith.constant dense<0.000000e+00> : vector<8x512xf32>
    %39 = tpu.matmul %37, %38, %cst_18 {dimension_numbers = #tpu.dot_dimension_numbers<[1], [0], [0], [1], [0, 0, 1, 1], [], []>} : vector<8x128xbf16>, vector<128x512xbf16>, vector<8x512xf32> -> vector<8x512xf32>
    %40 = arith.addf %36, %39 : vector<8x512xf32>
    %41 = vector.extract_strided_slice %40 {offsets = [0, 0], sizes = [8, 384], strides = [1, 1]} : vector<8x512xf32> to vector<8x384xf32>
    %42 = arith.negf %41 : vector<8x384xf32>
    %43 = math.exp %42 : vector<8x384xf32>
    %cst_19 = arith.constant 1.000000e+00 : f32
    %44 = vector.broadcast %cst_19 : f32 to vector<8x384xf32>
    %45 = arith.addf %44, %43 : vector<8x384xf32>
    %46 = arith.divf %44, %45 : vector<8x384xf32>
    %47 = vector.extract_strided_slice %46 {offsets = [0, 0], sizes = [8, 128], strides = [1, 1]} : vector<8x384xf32> to vector<8x128xf32>
    %48 = vector.extract_strided_slice %46 {offsets = [0, 128], sizes = [8, 128], strides = [1, 1]} : vector<8x384xf32> to vector<8x128xf32>
    %49 = vector.extract_strided_slice %46 {offsets = [0, 256], sizes = [8, 128], strides = [1, 1]} : vector<8x384xf32> to vector<8x128xf32>
    %50 = vector.extract_strided_slice %40 {offsets = [0, 384], sizes = [8, 128], strides = [1, 1]} : vector<8x512xf32> to vector<8x128xf32>
    %51 = math.tanh %50 : vector<8x128xf32>
    %52 = arith.mulf %48, %30 : vector<8x128xf32>
    %53 = arith.mulf %47, %51 : vector<8x128xf32>
    %54 = arith.addf %52, %53 : vector<8x128xf32>
    %55 = math.tanh %54 : vector<8x128xf32>
    %56 = arith.mulf %49, %55 : vector<8x128xf32>
    %c2_i32 = arith.constant 2 : i32
    %c8_i32_20 = arith.constant 8 : i32
    %57 = arith.muli %c2_i32, %c8_i32_20 : i32
    %58 = tpu.assume_multiple %57, 8 : i32
    %59 = arith.index_cast %58 : i32 to index
    %c0_21 = arith.constant 0 : index
    %60 = vector.load %arg7[%59, %c0_21] : memref<64x512xf32, #tpu.memory_space<vmem>>, vector<8x512xf32>
    %61 = arith.truncf %56 : vector<8x128xf32> to vector<8x128xbf16>
    %c0_22 = arith.constant 0 : index
    %c0_23 = arith.constant 0 : index
    %62 = vector.load %arg2[%c0_22, %c0_23] : memref<128x512xbf16, #tpu.memory_space<vmem>>, vector<128x512xbf16>
    %cst_24 = arith.constant dense<0.000000e+00> : vector<8x512xf32>
    %63 = tpu.matmul %61, %62, %cst_24 {dimension_numbers = #tpu.dot_dimension_numbers<[1], [0], [0], [1], [0, 0, 1, 1], [], []>} : vector<8x128xbf16>, vector<128x512xbf16>, vector<8x512xf32> -> vector<8x512xf32>
    %64 = arith.addf %60, %63 : vector<8x512xf32>
    %65 = vector.extract_strided_slice %64 {offsets = [0, 0], sizes = [8, 384], strides = [1, 1]} : vector<8x512xf32> to vector<8x384xf32>
    %66 = arith.negf %65 : vector<8x384xf32>
    %67 = math.exp %66 : vector<8x384xf32>
    %cst_25 = arith.constant 1.000000e+00 : f32
    %68 = vector.broadcast %cst_25 : f32 to vector<8x384xf32>
    %69 = arith.addf %68, %67 : vector<8x384xf32>
    %70 = arith.divf %68, %69 : vector<8x384xf32>
    %71 = vector.extract_strided_slice %70 {offsets = [0, 0], sizes = [8, 128], strides = [1, 1]} : vector<8x384xf32> to vector<8x128xf32>
    %72 = vector.extract_strided_slice %70 {offsets = [0, 128], sizes = [8, 128], strides = [1, 1]} : vector<8x384xf32> to vector<8x128xf32>
    %73 = vector.extract_strided_slice %70 {offsets = [0, 256], sizes = [8, 128], strides = [1, 1]} : vector<8x384xf32> to vector<8x128xf32>
    %74 = vector.extract_strided_slice %64 {offsets = [0, 384], sizes = [8, 128], strides = [1, 1]} : vector<8x512xf32> to vector<8x128xf32>
    %75 = math.tanh %74 : vector<8x128xf32>
    %76 = arith.mulf %72, %54 : vector<8x128xf32>
    %77 = arith.mulf %71, %75 : vector<8x128xf32>
    %78 = arith.addf %76, %77 : vector<8x128xf32>
    %79 = math.tanh %78 : vector<8x128xf32>
    %80 = arith.mulf %73, %79 : vector<8x128xf32>
    %c3_i32 = arith.constant 3 : i32
    %c8_i32_26 = arith.constant 8 : i32
    %81 = arith.muli %c3_i32, %c8_i32_26 : i32
    %82 = tpu.assume_multiple %81, 8 : i32
    %83 = arith.index_cast %82 : i32 to index
    %c0_27 = arith.constant 0 : index
    %84 = vector.load %arg7[%83, %c0_27] : memref<64x512xf32, #tpu.memory_space<vmem>>, vector<8x512xf32>
    %85 = arith.truncf %80 : vector<8x128xf32> to vector<8x128xbf16>
    %c0_28 = arith.constant 0 : index
    %c0_29 = arith.constant 0 : index
    %86 = vector.load %arg2[%c0_28, %c0_29] : memref<128x512xbf16, #tpu.memory_space<vmem>>, vector<128x512xbf16>
    %cst_30 = arith.constant dense<0.000000e+00> : vector<8x512xf32>
    %87 = tpu.matmul %85, %86, %cst_30 {dimension_numbers = #tpu.dot_dimension_numbers<[1], [0], [0], [1], [0, 0, 1, 1], [], []>} : vector<8x128xbf16>, vector<128x512xbf16>, vector<8x512xf32> -> vector<8x512xf32>
    %88 = arith.addf %84, %87 : vector<8x512xf32>
    %89 = vector.extract_strided_slice %88 {offsets = [0, 0], sizes = [8, 384], strides = [1, 1]} : vector<8x512xf32> to vector<8x384xf32>
    %90 = arith.negf %89 : vector<8x384xf32>
    %91 = math.exp %90 : vector<8x384xf32>
    %cst_31 = arith.constant 1.000000e+00 : f32
    %92 = vector.broadcast %cst_31 : f32 to vector<8x384xf32>
    %93 = arith.addf %92, %91 : vector<8x384xf32>
    %94 = arith.divf %92, %93 : vector<8x384xf32>
    %95 = vector.extract_strided_slice %94 {offsets = [0, 0], sizes = [8, 128], strides = [1, 1]} : vector<8x384xf32> to vector<8x128xf32>
    %96 = vector.extract_strided_slice %94 {offsets = [0, 128], sizes = [8, 128], strides = [1, 1]} : vector<8x384xf32> to vector<8x128xf32>
    %97 = vector.extract_strided_slice %94 {offsets = [0, 256], sizes = [8, 128], strides = [1, 1]} : vector<8x384xf32> to vector<8x128xf32>
    %98 = vector.extract_strided_slice %88 {offsets = [0, 384], sizes = [8, 128], strides = [1, 1]} : vector<8x512xf32> to vector<8x128xf32>
    %99 = math.tanh %98 : vector<8x128xf32>
    %100 = arith.mulf %96, %78 : vector<8x128xf32>
    %101 = arith.mulf %95, %99 : vector<8x128xf32>
    %102 = arith.addf %100, %101 : vector<8x128xf32>
    %103 = math.tanh %102 : vector<8x128xf32>
    %104 = arith.mulf %97, %103 : vector<8x128xf32>
    %c4_i32 = arith.constant 4 : i32
    %c8_i32_32 = arith.constant 8 : i32
    %105 = arith.muli %c4_i32, %c8_i32_32 : i32
    %106 = tpu.assume_multiple %105, 8 : i32
    %107 = arith.index_cast %106 : i32 to index
    %c0_33 = arith.constant 0 : index
    %108 = vector.load %arg7[%107, %c0_33] : memref<64x512xf32, #tpu.memory_space<vmem>>, vector<8x512xf32>
    %109 = arith.truncf %104 : vector<8x128xf32> to vector<8x128xbf16>
    %c0_34 = arith.constant 0 : index
    %c0_35 = arith.constant 0 : index
    %110 = vector.load %arg2[%c0_34, %c0_35] : memref<128x512xbf16, #tpu.memory_space<vmem>>, vector<128x512xbf16>
    %cst_36 = arith.constant dense<0.000000e+00> : vector<8x512xf32>
    %111 = tpu.matmul %109, %110, %cst_36 {dimension_numbers = #tpu.dot_dimension_numbers<[1], [0], [0], [1], [0, 0, 1, 1], [], []>} : vector<8x128xbf16>, vector<128x512xbf16>, vector<8x512xf32> -> vector<8x512xf32>
    %112 = arith.addf %108, %111 : vector<8x512xf32>
    %113 = vector.extract_strided_slice %112 {offsets = [0, 0], sizes = [8, 384], strides = [1, 1]} : vector<8x512xf32> to vector<8x384xf32>
    %114 = arith.negf %113 : vector<8x384xf32>
    %115 = math.exp %114 : vector<8x384xf32>
    %cst_37 = arith.constant 1.000000e+00 : f32
    %116 = vector.broadcast %cst_37 : f32 to vector<8x384xf32>
    %117 = arith.addf %116, %115 : vector<8x384xf32>
    %118 = arith.divf %116, %117 : vector<8x384xf32>
    %119 = vector.extract_strided_slice %118 {offsets = [0, 0], sizes = [8, 128], strides = [1, 1]} : vector<8x384xf32> to vector<8x128xf32>
    %120 = vector.extract_strided_slice %118 {offsets = [0, 128], sizes = [8, 128], strides = [1, 1]} : vector<8x384xf32> to vector<8x128xf32>
    %121 = vector.extract_strided_slice %118 {offsets = [0, 256], sizes = [8, 128], strides = [1, 1]} : vector<8x384xf32> to vector<8x128xf32>
    %122 = vector.extract_strided_slice %112 {offsets = [0, 384], sizes = [8, 128], strides = [1, 1]} : vector<8x512xf32> to vector<8x128xf32>
    %123 = math.tanh %122 : vector<8x128xf32>
    %124 = arith.mulf %120, %102 : vector<8x128xf32>
    %125 = arith.mulf %119, %123 : vector<8x128xf32>
    %126 = arith.addf %124, %125 : vector<8x128xf32>
    %127 = math.tanh %126 : vector<8x128xf32>
    %128 = arith.mulf %121, %127 : vector<8x128xf32>
    %c5_i32 = arith.constant 5 : i32
    %c8_i32_38 = arith.constant 8 : i32
    %129 = arith.muli %c5_i32, %c8_i32_38 : i32
    %130 = tpu.assume_multiple %129, 8 : i32
    %131 = arith.index_cast %130 : i32 to index
    %c0_39 = arith.constant 0 : index
    %132 = vector.load %arg7[%131, %c0_39] : memref<64x512xf32, #tpu.memory_space<vmem>>, vector<8x512xf32>
    %133 = arith.truncf %128 : vector<8x128xf32> to vector<8x128xbf16>
    %c0_40 = arith.constant 0 : index
    %c0_41 = arith.constant 0 : index
    %134 = vector.load %arg2[%c0_40, %c0_41] : memref<128x512xbf16, #tpu.memory_space<vmem>>, vector<128x512xbf16>
    %cst_42 = arith.constant dense<0.000000e+00> : vector<8x512xf32>
    %135 = tpu.matmul %133, %134, %cst_42 {dimension_numbers = #tpu.dot_dimension_numbers<[1], [0], [0], [1], [0, 0, 1, 1], [], []>} : vector<8x128xbf16>, vector<128x512xbf16>, vector<8x512xf32> -> vector<8x512xf32>
    %136 = arith.addf %132, %135 : vector<8x512xf32>
    %137 = vector.extract_strided_slice %136 {offsets = [0, 0], sizes = [8, 384], strides = [1, 1]} : vector<8x512xf32> to vector<8x384xf32>
    %138 = arith.negf %137 : vector<8x384xf32>
    %139 = math.exp %138 : vector<8x384xf32>
    %cst_43 = arith.constant 1.000000e+00 : f32
    %140 = vector.broadcast %cst_43 : f32 to vector<8x384xf32>
    %141 = arith.addf %140, %139 : vector<8x384xf32>
    %142 = arith.divf %140, %141 : vector<8x384xf32>
    %143 = vector.extract_strided_slice %142 {offsets = [0, 0], sizes = [8, 128], strides = [1, 1]} : vector<8x384xf32> to vector<8x128xf32>
    %144 = vector.extract_strided_slice %142 {offsets = [0, 128], sizes = [8, 128], strides = [1, 1]} : vector<8x384xf32> to vector<8x128xf32>
    %145 = vector.extract_strided_slice %142 {offsets = [0, 256], sizes = [8, 128], strides = [1, 1]} : vector<8x384xf32> to vector<8x128xf32>
    %146 = vector.extract_strided_slice %136 {offsets = [0, 384], sizes = [8, 128], strides = [1, 1]} : vector<8x512xf32> to vector<8x128xf32>
    %147 = math.tanh %146 : vector<8x128xf32>
    %148 = arith.mulf %144, %126 : vector<8x128xf32>
    %149 = arith.mulf %143, %147 : vector<8x128xf32>
    %150 = arith.addf %148, %149 : vector<8x128xf32>
    %151 = math.tanh %150 : vector<8x128xf32>
    %152 = arith.mulf %145, %151 : vector<8x128xf32>
    %c6_i32 = arith.constant 6 : i32
    %c8_i32_44 = arith.constant 8 : i32
    %153 = arith.muli %c6_i32, %c8_i32_44 : i32
    %154 = tpu.assume_multiple %153, 8 : i32
    %155 = arith.index_cast %154 : i32 to index
    %c0_45 = arith.constant 0 : index
    %156 = vector.load %arg7[%155, %c0_45] : memref<64x512xf32, #tpu.memory_space<vmem>>, vector<8x512xf32>
    %157 = arith.truncf %152 : vector<8x128xf32> to vector<8x128xbf16>
    %c0_46 = arith.constant 0 : index
    %c0_47 = arith.constant 0 : index
    %158 = vector.load %arg2[%c0_46, %c0_47] : memref<128x512xbf16, #tpu.memory_space<vmem>>, vector<128x512xbf16>
    %cst_48 = arith.constant dense<0.000000e+00> : vector<8x512xf32>
    %159 = tpu.matmul %157, %158, %cst_48 {dimension_numbers = #tpu.dot_dimension_numbers<[1], [0], [0], [1], [0, 0, 1, 1], [], []>} : vector<8x128xbf16>, vector<128x512xbf16>, vector<8x512xf32> -> vector<8x512xf32>
    %160 = arith.addf %156, %159 : vector<8x512xf32>
    %161 = vector.extract_strided_slice %160 {offsets = [0, 0], sizes = [8, 384], strides = [1, 1]} : vector<8x512xf32> to vector<8x384xf32>
    %162 = arith.negf %161 : vector<8x384xf32>
    %163 = math.exp %162 : vector<8x384xf32>
    %cst_49 = arith.constant 1.000000e+00 : f32
    %164 = vector.broadcast %cst_49 : f32 to vector<8x384xf32>
    %165 = arith.addf %164, %163 : vector<8x384xf32>
    %166 = arith.divf %164, %165 : vector<8x384xf32>
    %167 = vector.extract_strided_slice %166 {offsets = [0, 0], sizes = [8, 128], strides = [1, 1]} : vector<8x384xf32> to vector<8x128xf32>
    %168 = vector.extract_strided_slice %166 {offsets = [0, 128], sizes = [8, 128], strides = [1, 1]} : vector<8x384xf32> to vector<8x128xf32>
    %169 = vector.extract_strided_slice %166 {offsets = [0, 256], sizes = [8, 128], strides = [1, 1]} : vector<8x384xf32> to vector<8x128xf32>
    %170 = vector.extract_strided_slice %160 {offsets = [0, 384], sizes = [8, 128], strides = [1, 1]} : vector<8x512xf32> to vector<8x128xf32>
    %171 = math.tanh %170 : vector<8x128xf32>
    %172 = arith.mulf %168, %150 : vector<8x128xf32>
    %173 = arith.mulf %167, %171 : vector<8x128xf32>
    %174 = arith.addf %172, %173 : vector<8x128xf32>
    %175 = math.tanh %174 : vector<8x128xf32>
    %176 = arith.mulf %169, %175 : vector<8x128xf32>
    %c7_i32 = arith.constant 7 : i32
    %c8_i32_50 = arith.constant 8 : i32
    %177 = arith.muli %c7_i32, %c8_i32_50 : i32
    %178 = tpu.assume_multiple %177, 8 : i32
    %179 = arith.index_cast %178 : i32 to index
    %c0_51 = arith.constant 0 : index
    %180 = vector.load %arg7[%179, %c0_51] : memref<64x512xf32, #tpu.memory_space<vmem>>, vector<8x512xf32>
    %181 = arith.truncf %176 : vector<8x128xf32> to vector<8x128xbf16>
    %c0_52 = arith.constant 0 : index
    %c0_53 = arith.constant 0 : index
    %182 = vector.load %arg2[%c0_52, %c0_53] : memref<128x512xbf16, #tpu.memory_space<vmem>>, vector<128x512xbf16>
    %cst_54 = arith.constant dense<0.000000e+00> : vector<8x512xf32>
    %183 = tpu.matmul %181, %182, %cst_54 {dimension_numbers = #tpu.dot_dimension_numbers<[1], [0], [0], [1], [0, 0, 1, 1], [], []>} : vector<8x128xbf16>, vector<128x512xbf16>, vector<8x512xf32> -> vector<8x512xf32>
    %184 = arith.addf %180, %183 : vector<8x512xf32>
    %185 = vector.extract_strided_slice %184 {offsets = [0, 0], sizes = [8, 384], strides = [1, 1]} : vector<8x512xf32> to vector<8x384xf32>
    %186 = arith.negf %185 : vector<8x384xf32>
    %187 = math.exp %186 : vector<8x384xf32>
    %cst_55 = arith.constant 1.000000e+00 : f32
    %188 = vector.broadcast %cst_55 : f32 to vector<8x384xf32>
    %189 = arith.addf %188, %187 : vector<8x384xf32>
    %190 = arith.divf %188, %189 : vector<8x384xf32>
    %191 = vector.extract_strided_slice %190 {offsets = [0, 0], sizes = [8, 128], strides = [1, 1]} : vector<8x384xf32> to vector<8x128xf32>
    %192 = vector.extract_strided_slice %190 {offsets = [0, 128], sizes = [8, 128], strides = [1, 1]} : vector<8x384xf32> to vector<8x128xf32>
    %193 = vector.extract_strided_slice %190 {offsets = [0, 256], sizes = [8, 128], strides = [1, 1]} : vector<8x384xf32> to vector<8x128xf32>
    %194 = vector.extract_strided_slice %184 {offsets = [0, 384], sizes = [8, 128], strides = [1, 1]} : vector<8x512xf32> to vector<8x128xf32>
    %195 = math.tanh %194 : vector<8x128xf32>
    %196 = arith.mulf %192, %174 : vector<8x128xf32>
    %197 = arith.mulf %191, %195 : vector<8x128xf32>
    %198 = arith.addf %196, %197 : vector<8x128xf32>
    %199 = math.tanh %198 : vector<8x128xf32>
    %200 = arith.mulf %193, %199 : vector<8x128xf32>
    %c8_i32_56 = arith.constant 8 : i32
    %c0_57 = arith.constant 0 : index
    %c0_58 = arith.constant 0 : index
    %201 = vector.load %arg4[%c0_57, %c0_58] : memref<1x128xf32, #tpu.memory_space<vmem>>, vector<1x128xf32>
    %202 = vector.broadcast %201 : vector<1x128xf32> to vector<8x128xf32>
    %203 = arith.mulf %200, %202 : vector<8x128xf32>
    %cst_59 = arith.constant dense<0.000000e+00> : vector<8xf32>
    %204 = vector.multi_reduction <add>, %203, %cst_59 [1] : vector<8x128xf32> to vector<8xf32>
    %205 = vector.shape_cast %204 : vector<8xf32> to vector<8x1xf32>
    %c0_60 = arith.constant 0 : index
    %c0_61 = arith.constant 0 : index
    %206 = vector.load %arg5[%c0_60, %c0_61] : memref<1x1xf32, #tpu.memory_space<vmem>>, vector<1x1xf32>
    %207 = vector.broadcast %206 : vector<1x1xf32> to vector<8x1xf32>
    %208 = arith.addf %205, %207 : vector<8x1xf32>
    %c0_62 = arith.constant 0 : index
    %c0_63 = arith.constant 0 : index
    %209 = vector.load %arg6[%c0_62, %c0_63] : memref<8x1xf32, #tpu.memory_space<vmem>>, vector<8x1xf32>
    tpu.vector_store %arg6[%c0_62, %c0_63], %208 {strides = array<i32>} : memref<8x1xf32, #tpu.memory_space<vmem>>, vector<8x1xf32>,
    return
  }
}

</mosaic_0001>

<bundles_post_ra>
// kernel: tpu_custom_call.1
= control target key start
LH: loop header
LB: loop body
LE: loop exit
PB: predicated region body
PF: predicated region fallthrough
CT: control target
= control target key end

     0   :  { %s2399_s0 = inlined_call_operand.vmem [shape: bf16[64,5], index: 0, kind: input, shape index: {}]   ;;  %s2400_s1 = inlined_call_operand.vmem [shape: bf16[5,512], index: 1, kind: input, shape index: {}]   ;;  %s2401_s2 = inlined_call_operand.hbm [shape: bf16[128,512], index: 2, kind: input, shape index: {}]   ;;  %s2402_s3 = inlined_call_operand.vmem [shape: f32[1,512], index: 3, kind: input, shape index: {}]   ;;  %s2403_s4 = inlined_call_operand.vmem [shape: f32[1,128], index: 4, kind: input, shape index: {}]   ;;  %s2404_s5 = inlined_call_operand.<no memory space> [shape: f32[1,1], index: 5, kind: input, shape index: {}]   ;;  %s2405_s6 = inlined_call_operand.vmem [shape: f32[8,1], index: 6, kind: output, shape index: {}]  }
   0x1   :  { %v11_v0 = vstv %s2404_s5 }
   0x2   :  { %12 = vst [vmem:[#allocation3] sm:$0x1] %v11_v0 }
   0x3   :  { %13 = vsyncpa [#allocation5], 0  ;;  %s1795_s23 = smov [#allocation4]   ;;  %s1771_s27 = scalar_lea.hbm %s2401_s2, 4096 }
   0x4   :  { %s23_s24 = sshll.u32 %s1795_s23, 4  ;;  %p1772_p0 = scmp.ne.s32.totalorder %s2401_s2, %s1771_s27  ;;  %s24_s24 = int_to_ptr.vmem [resolvable:$true] %s23_s24 }
   0x5   :  { %p1775_p1 = scmp.lt.u32.totalorder %s1771_s27, %s2401_s2 }
   0x7   :  { %p1777_p2 = pnand %p1775_p1, %p1772_p0 }
   0x9   :  { %1780 = shalt.err (!%p1777_p2)
}
   0xa   :  { %s1781_s5 = scalar_lea.vmem %s24_s24, 4096  ;;  %p1786_p4 = scmp.lt.s32.totalorder %s24_s24, %s24_s24 }
   0xb   :  { %p1782_p3 = scmp.ne.s32.totalorder %s24_s24, %s1781_s5  ;;  %p1787_p5 = scmp.lt.s32.totalorder %s1781_s5, %s1781_s5 }
   0xd   :  { %p1788_p6 = por %p1787_p5, %p1786_p4 }
   0xf   :  { %p1789_p7 = pnand %p1788_p6, %p1782_p3 }
  0x11   :  { %1792 = shalt.err (!%p1789_p7)
}
  0x12   :  { %s1796_s8 = smov 256   ;;  %s1797_s9 = smov 16  }
  0x13   :  { %29 = dma.hbm_to_vmem [thread:$0]  %s2401_s2, 4096, %s24_s24, [#allocation5], %s1796_s8, %s1796_s8, %s1797_s9  }
  0x14   :  { %1793 = dma.done.wait [#allocation5], 4096  }
  0x15   :  { %1794 = vsyncadd [#allocation5], 4294963200  ;;  %vm115_vm0 = vcmask 1041408   ;;  %v2406_v1 = vmov 0   ;;  %vm116_vm1 = vcmask 1042432   ;;  %v1799_v2 = vmov 65535  }
  0x16   :  { %163 = vmatprep.mubr.bf16.mxu0 %v2406_v1  ;;  %236 = vmatprep.mubr.bf16.mxu1 %v2406_v1  ;;  %v117_v3 = vsel %vm115_vm0, 4294967295, %v1799_v2  ;;  %v48_v5 = vld [vmem:[%s2400_s1] sm:$0x77]  ;;  %v49_v6 = vld [vmem:[%s2400_s1 + $0x8] sm:$0x77]  ;;  %vm102_vm2 = vcmask 39936   ;;  %v52_v51 = vlaneseq }
  0x17   :  { %v118_v4 = vsel %vm116_vm1, %v117_v3, 0  ;;  %v1481_v7 = vcombine.high %v48_v5, %v48_v5  ;;  %v1483_v8 = vcombine.high %v49_v6, %v49_v6  ;;  %v1480_v9 = vcombine.low %v48_v5, %v48_v5  ;;  %v1858_v15 = vld [vmem:[#allocation4 + $0x4] ss:$16 sps:$4 sm:$0xff]   ;;  %v1860_v16 = vld [vmem:[#allocation4 + $0xc] ss:$16 sps:$4 sm:$0xff]  }
  0x18   :  { %v1482_v10 = vcombine.low %v49_v6, %v49_v6  ;;  %v1559_v17 = vld [vmem:[%s2399_s0] sm:$0xff]   ;;  %v1867_v19 = vld [vmem:[#allocation4 + $0x8] ss:$16 sps:$4 sm:$0xff]   ;;  %v1585_v35 = vld [vmem:[%s2399_s0 + $0x10] sm:$0xff]   ;;  %v53_v52 = vshrl.u32 %v52_v51, 7  ;;  %vm1462_vm3 = vcmask 7168  }
  0x19   :  { %v123_v11 = vand.u32 %v1481_v7, %v118_v4  ;;  %v129_v12 = vand.u32 %v1483_v8, %v118_v4  ;;  %v120_v13 = vand.u32 %v1480_v9, %v118_v4  ;;  %v1865_v18 = vld [vmem:[#allocation4] ss:$16 sps:$4 sm:$0xff]   ;;  %v1869_v20 = vld [vmem:[#allocation4 + $0x24] ss:$16 sps:$4 sm:$0xff]   ;;  %v1873_v21 = vld [vmem:[#allocation4 + $0x2c] ss:$16 sps:$4 sm:$0xff]  }
  0x1a   :  { %v126_v14 = vand.u32 %v1482_v10, %v118_v4  ;;  %v1877_v22 = vld [vmem:[#allocation4 + $0x20] ss:$16 sps:$4 sm:$0xff]   ;;  %v1881_v23 = vld [vmem:[#allocation4 + $0x28] ss:$16 sps:$4 sm:$0xff]   ;;  %v1883_v24 = vld [vmem:[#allocation4 + $0x44] ss:$16 sps:$4 sm:$0xff]  }
  0x1b   :  { %131 = vmatprep.subr.bf16.mxu0 %v123_v11  ;;  %204 = vmatprep.subr.bf16.mxu1 %v129_v12  ;;  %v1887_v25 = vld [vmem:[#allocation4 + $0x4c] ss:$16 sps:$4 sm:$0xff]   ;;  %v1894_v27 = vld [vmem:[#allocation4 + $0x40] ss:$16 sps:$4 sm:$0xff]   ;;  %v1896_v28 = vld [vmem:[#allocation4 + $0x48] ss:$16 sps:$4 sm:$0xff]  }
  0x1c   :  { %132 = vmatpush1.bf16.msra.mxu0 %v120_v13  ;;  %205 = vmatpush1.bf16.msra.mxu1 %v126_v14  ;;  %v1572_v26 = vld [vmem:[%s2399_s0 + $0x8] sm:$0xff]   ;;  %v1908_v31 = vld [vmem:[#allocation4 + $0x60] ss:$16 sps:$4 sm:$0xff]   ;;  %v1598_v44 = vld [vmem:[%s2399_s0 + $0x18] sm:$0xff]   ;;  %v62_v53 = vsub.s32 2, %v53_v52  ;;  %v66_v54 = vsub.s32 3, %v53_v52 }
  0x1d   :  { %508 = vmatprep.subr.bf16.mxu0 %v1858_v15  ;;  %549 = vmatprep.subr.bf16.mxu1 %v1860_v16  ;;  %v1900_v29 = vld [vmem:[#allocation4 + $0x64] ss:$16 sps:$4 sm:$0xff]   ;;  %v1904_v30 = vld [vmem:[#allocation4 + $0x6c] ss:$16 sps:$4 sm:$0xff]   ;;  %v1912_v32 = vld [vmem:[#allocation4 + $0x68] ss:$16 sps:$4 sm:$0xff]  }
  0x1e   :  { %v1916_v33 = vld [vmem:[#allocation4 + $0x84] ss:$16 sps:$4 sm:$0xff]   ;;  %v1918_v34 = vld [vmem:[#allocation4 + $0x8c] ss:$16 sps:$4 sm:$0xff]   ;;  %v1925_v36 = vld [vmem:[#allocation4 + $0x80] ss:$16 sps:$4 sm:$0xff]  }
  0x1f   :  { %1484 = vmatmul.mubr.msk.bf16.vlgmr.msra.gmra.mrb[0].mxu0 %vm102_vm2, %v1559_v17  ;;  %1488 = vmatmul.mubr.msk.bf16.vlgmr.msra.gmra.mrb[0].mxu1 %vm102_vm2, %v1559_v17  ;;  %v1929_v37 = vld [vmem:[#allocation4 + $0x88] ss:$16 sps:$4 sm:$0xff]   ;;  %v1931_v38 = vld [vmem:[#allocation4 + $0xa4] ss:$16 sps:$4 sm:$0xff]   ;;  %v1935_v39 = vld [vmem:[#allocation4 + $0xac] ss:$16 sps:$4 sm:$0xff]  }
  0x20   :  { %509 = vmatpush1.bf16.msra.mxu0 %v1865_v18  ;;  %550 = vmatpush1.bf16.msra.mxu1 %v1867_v19  ;;  %v1941_v40 = vld [vmem:[#allocation4 + $0xa0] ss:$16 sps:$4 sm:$0xff]   ;;  %v1943_v41 = vld [vmem:[#allocation4 + $0xa8] ss:$16 sps:$4 sm:$0xff]   ;;  %v1947_v42 = vld [vmem:[#allocation4 + $0xc4] ss:$16 sps:$4 sm:$0xff]  }
  0x21   :  { %510 = vmatprep.subr.bf16.mxu0 %v1869_v20  ;;  %551 = vmatprep.subr.bf16.mxu1 %v1873_v21  ;;  %v1949_v43 = vld [vmem:[#allocation4 + $0xcc] ss:$16 sps:$4 sm:$0xff]   ;;  %v1958_v45 = vld [vmem:[#allocation4 + $0xc0] ss:$16 sps:$4 sm:$0xff]   ;;  %v1960_v46 = vld [vmem:[#allocation4 + $0xc8] ss:$16 sps:$4 sm:$0xff]  }
  0x22   :  { %173 = vmatprep.mubr.bf16.mxu0 %v2406_v1  ;;  %246 = vmatprep.mubr.bf16.mxu1 %v2406_v1  ;;  %v1964_v47 = vld [vmem:[#allocation4 + $0xe4] ss:$16 sps:$4 sm:$0xff]   ;;  %v1966_v48 = vld [vmem:[#allocation4 + $0xec] ss:$16 sps:$4 sm:$0xff]   ;;  %v1972_v49 = vld [vmem:[#allocation4 + $0xe0] ss:$16 sps:$4 sm:$0xff]  }
  0x23   :  { %v1974_v50 = vld [vmem:[#allocation4 + $0xe8] ss:$16 sps:$4 sm:$0xff]   ;;  %v54_v55 = vsub.s32 0, %v53_v52  ;;  %v50_v56 = vld [vmem:[%s2402_s3] sm:$0xf]  ;;  %v58_v57 = vsub.s32 1, %v53_v52 }
  0x24   :  { %511 = vmatpush1.bf16.msra.mxu0 %v1877_v22  ;;  %552 = vmatpush1.bf16.msra.mxu1 %v1881_v23  ;;  %v2023_v58 = vrot.slane %v50_v56, %v62_v53  ;;  %v2029_v61 = vrot.slane %v50_v56, %v66_v54 }
  0x25   :  { %512 = vmatprep.subr.bf16.mxu0 %v1883_v24  ;;  %553 = vmatprep.subr.bf16.mxu1 %v1887_v25  ;;  %v55_v62 = vrot.slane %v50_v56, %v54_v55  ;;  %v59_v2 = vrot.slane %v50_v56, %v58_v57 }
  0x27   :  { %1485 = vmatmul.mubr.msk.bf16.gmra.mrb[4].mxu0 %vm102_vm2, %v1572_v26  ;;  %1489 = vmatmul.mubr.msk.bf16.gmra.mrb[4].mxu1 %vm102_vm2, %v1572_v26 }
  0x28   :  { %513 = vmatpush1.bf16.msra.mxu0 %v1894_v27  ;;  %554 = vmatpush1.bf16.msra.mxu1 %v1896_v28 }
  0x29   :  { %514 = vmatprep.subr.bf16.mxu0 %v1900_v29  ;;  %555 = vmatprep.subr.bf16.mxu1 %v1904_v30 }
  0x2a   :  { %183 = vmatprep.mubr.bf16.mxu0 %v2406_v1  ;;  %256 = vmatprep.mubr.bf16.mxu1 %v2406_v1 }
  0x2c   :  { %515 = vmatpush1.bf16.msra.mxu0 %v1908_v31  ;;  %556 = vmatpush1.bf16.msra.mxu1 %v1912_v32 }
  0x2d   :  { %516 = vmatprep.subr.bf16.mxu0 %v1916_v33  ;;  %557 = vmatprep.subr.bf16.mxu1 %v1918_v34 }
  0x2f   :  { %1486 = vmatmul.mubr.msk.bf16.gmra.mrb[8].mxu0 %vm102_vm2, %v1585_v35  ;;  %1490 = vmatmul.mubr.msk.bf16.gmra.mrb[8].mxu1 %vm102_vm2, %v1585_v35 }
  0x30   :  { %517 = vmatpush1.bf16.msra.mxu0 %v1925_v36  ;;  %558 = vmatpush1.bf16.msra.mxu1 %v1929_v37 }
  0x31   :  { %518 = vmatprep.subr.bf16.mxu0 %v1931_v38  ;;  %559 = vmatprep.subr.bf16.mxu1 %v1935_v39 }
  0x32   :  { %193 = vmatprep.mubr.bf16.mxu0 %v2406_v1  ;;  %266 = vmatprep.mubr.bf16.mxu1 %v2406_v1 }
  0x34   :  { %519 = vmatpush1.bf16.msra.mxu0 %v1941_v40  ;;  %560 = vmatpush1.bf16.msra.mxu1 %v1943_v41 }
  0x35   :  { %520 = vmatprep.subr.bf16.mxu0 %v1947_v42  ;;  %561 = vmatprep.subr.bf16.mxu1 %v1949_v43 }
  0x37   :  { %1487 = vmatmul.mubr.msk.bf16.gmra.mrb[12].mxu0 %vm102_vm2, %v1598_v44  ;;  %1491 = vmatmul.mubr.msk.bf16.gmra.mrb[12].mxu1 %vm102_vm2, %v1598_v44 }
  0x38   :  { %521 = vmatpush1.bf16.msra.mxu0 %v1958_v45  ;;  %562 = vmatpush1.bf16.msra.mxu1 %v1960_v46 }
  0x39   :  { %522 = vmatprep.subr.bf16.mxu0 %v1964_v47  ;;  %563 = vmatprep.subr.bf16.mxu1 %v1966_v48 }
  0x3a   :  { %540 = vmatprep.mubr.bf16.mxu0 %v2406_v1  ;;  %581 = vmatprep.mubr.bf16.mxu1 %v2406_v1 }
  0x3c   :  { %523 = vmatpush1.bf16.msra.mxu0 %v1972_v49  ;;  %564 = vmatpush1.bf16.msra.mxu1 %v1974_v50 }
  0x3d   :  { %626 = vmatprep.subr.bf16.mxu0 %v1858_v15  ;;  %667 = vmatprep.subr.bf16.mxu1 %v1860_v16 }
  0x3f   :  { %541 = vmatmul.mubr.bf16.vlgmr.msra.gmra.mrb[16].mxu0 %v2406_v1  ;;  %582 = vmatmul.mubr.bf16.vlgmr.msra.gmra.mrb[16].mxu1 %v2406_v1 }
  0x40   :  { %627 = vmatpush1.bf16.msra.mxu0 %v1865_v18  ;;  %668 = vmatpush1.bf16.msra.mxu1 %v1867_v19 }
  0x41   :  { %628 = vmatprep.subr.bf16.mxu0 %v1869_v20  ;;  %669 = vmatprep.subr.bf16.mxu1 %v1873_v21 }
  0x42   :  { %658 = vmatprep.mubr.bf16.mxu0 %v2406_v1  ;;  %699 = vmatprep.mubr.bf16.mxu1 %v2406_v1 }
  0x44   :  { %629 = vmatpush1.bf16.msra.mxu0 %v1877_v22  ;;  %670 = vmatpush1.bf16.msra.mxu1 %v1881_v23 }
  0x45   :  { %630 = vmatprep.subr.bf16.mxu0 %v1883_v24  ;;  %671 = vmatprep.subr.bf16.mxu1 %v1887_v25 }
  0x48   :  { %631 = vmatpush1.bf16.msra.mxu0 %v1894_v27  ;;  %672 = vmatpush1.bf16.msra.mxu1 %v1896_v28 }
  0x49   :  { %632 = vmatprep.subr.bf16.mxu0 %v1900_v29  ;;  %673 = vmatprep.subr.bf16.mxu1 %v1904_v30 }
  0x4c   :  { %633 = vmatpush1.bf16.msra.mxu0 %v1908_v31  ;;  %674 = vmatpush1.bf16.msra.mxu1 %v1912_v32 }
  0x4d   :  { %634 = vmatprep.subr.bf16.mxu0 %v1916_v33  ;;  %675 = vmatprep.subr.bf16.mxu1 %v1918_v34 }
  0x50   :  { %635 = vmatpush1.bf16.msra.mxu0 %v1925_v36  ;;  %676 = vmatpush1.bf16.msra.mxu1 %v1929_v37 }
  0x51   :  { %636 = vmatprep.subr.bf16.mxu0 %v1931_v38  ;;  %677 = vmatprep.subr.bf16.mxu1 %v1935_v39 }
  0x54   :  { %637 = vmatpush1.bf16.msra.mxu0 %v1941_v40  ;;  %678 = vmatpush1.bf16.msra.mxu1 %v1943_v41 }
  0x55   :  { %638 = vmatprep.subr.bf16.mxu0 %v1947_v42  ;;  %679 = vmatprep.subr.bf16.mxu1 %v1949_v43 }
  0x58   :  { %639 = vmatpush1.bf16.msra.mxu0 %v1958_v45  ;;  %680 = vmatpush1.bf16.msra.mxu1 %v1960_v46 }
  0x59   :  { %640 = vmatprep.subr.bf16.mxu0 %v1964_v47  ;;  %681 = vmatprep.subr.bf16.mxu1 %v1966_v48 }
  0x5c   :  { %641 = vmatpush1.bf16.msra.mxu0 %v1972_v49  ;;  %682 = vmatpush1.bf16.msra.mxu1 %v1974_v50 }
  0x5d   :  { %744 = vmatprep.subr.bf16.mxu0 %v1858_v15  ;;  %785 = vmatprep.subr.bf16.mxu1 %v1860_v16 }
  0xf2   :  { %v2025_v59 = vpop.f32.mrb[0].mxu0  ;;  %v2027_v60 = vpop.f32.mrb[0].mxu1 }
  0xf3   :  { %v167_v63 = vpop.f32.mrb[1].mxu0  ;;  %v240_v0 = vpop.f32.mrb[1].mxu1 }
  0xf4   :  { %v169_v3 = vpop.f32.mrb[2].mxu0  ;;  %v242_v4 = vpop.f32.mrb[2].mxu1 }
  0xf5   :  { %v2031_v5 = vadd.f32 %v169_v3, %v55_v62  ;;  %v171_v6 = vpop.f32.mrb[3].mxu0  ;;  %v2034_v7 = vadd.f32 %v242_v4, %v2023_v58  ;;  %v244_v8 = vpop.f32.mrb[3].mxu1 }
  0xf6   :  { %v2036_v9 = vadd.f32 %v171_v6, %v59_v2  ;;  %v2039_v10 = vadd.f32 %v244_v8, %v2029_v61 }
  0xfa   :  { %v175_v11 = vpop.f32.mrb[4].mxu0  ;;  %v248_v12 = vpop.f32.mrb[4].mxu1 }
  0xfb   :  { %v2041_v13 = vadd.f32 %v175_v11, %v55_v62  ;;  %v177_v14 = vpop.f32.mrb[5].mxu0  ;;  %v2044_v17 = vadd.f32 %v248_v12, %v2023_v58  ;;  %v250_v26 = vpop.f32.mrb[5].mxu1 }
  0xfc   :  { %v2046_v35 = vadd.f32 %v177_v14, %v59_v2  ;;  %v179_v44 = vpop.f32.mrb[6].mxu0  ;;  %v2049_v51 = vadd.f32 %v250_v26, %v2029_v61  ;;  %v252_v52 = vpop.f32.mrb[6].mxu1 }
  0xfd   :  { %v2051_v53 = vadd.f32 %v179_v44, %v55_v62  ;;  %v181_v54 = vpop.f32.mrb[7].mxu0  ;;  %v2054_v55 = vadd.f32 %v252_v52, %v2023_v58  ;;  %v254_v56 = vpop.f32.mrb[7].mxu1 }
  0xfe   :  { %2408 = vst [vmem:[#allocation7_spill] sm:$0xff] %v2049_v51  ;;  %v2056_v57 = vadd.f32 %v181_v54, %v59_v2  ;;  %v2059_v3 = vadd.f32 %v254_v56, %v2029_v61 }
  0xff   :  { %2409 = vst [vmem:[#allocation8_spill] sm:$0xff] %v2051_v53  ;;  %2410 = vst [vmem:[#allocation9_spill] sm:$0xff] %v2054_v55 }
 0x100   :  { %2411 = vst [vmem:[#allocation10_spill] sm:$0xff] %v2056_v57  ;;  %2412 = vst [vmem:[#allocation11_spill] sm:$0xff] %v2059_v3 }
 0x102   :  { %v185_v4 = vpop.f32.mrb[8].mxu0  ;;  %v258_v6 = vpop.f32.mrb[8].mxu1 }
 0x103   :  { %v2061_v8 = vadd.f32 %v185_v4, %v55_v62  ;;  %v187_v11 = vpop.f32.mrb[9].mxu0  ;;  %v2064_v12 = vadd.f32 %v258_v6, %v2023_v58  ;;  %v260_v14 = vpop.f32.mrb[9].mxu1 }
 0x104   :  { %v2066_v26 = vadd.f32 %v187_v11, %v59_v2  ;;  %v189_v44 = vpop.f32.mrb[10].mxu0  ;;  %v2069_v52 = vadd.f32 %v260_v14, %v2029_v61  ;;  %v262_v54 = vpop.f32.mrb[10].mxu1 }
 0x105   :  { %2413 = vst [vmem:[#allocation12_spill] sm:$0xff] %v2061_v8  ;;  %2414 = vst [vmem:[#allocation13_spill] sm:$0xff] %v2064_v12  ;;  %v2071_v1 = vadd.f32 %v189_v44, %v55_v62  ;;  %v191_v56 = vpop.f32.mrb[11].mxu0  ;;  %v2074_v3 = vadd.f32 %v262_v54, %v2023_v58  ;;  %v264_v4 = vpop.f32.mrb[11].mxu1 }
 0x106   :  { %2415 = vst [vmem:[#allocation14_spill] sm:$0xff] %v2066_v26  ;;  %2416 = vst [vmem:[#allocation15_spill] sm:$0xff] %v2069_v52  ;;  %v2076_v8 = vadd.f32 %v191_v56, %v59_v2  ;;  %v2079_v6 = vadd.f32 %v264_v4, %v2029_v61 }
 0x107   :  { %2417 = vst [vmem:[#allocation16_spill] sm:$0xff] %v2071_v1  ;;  %2418 = vst [vmem:[#allocation17_spill] sm:$0xff] %v2074_v3 }
 0x108   :  { %2419 = vst [vmem:[#allocation18_spill] sm:$0xff] %v2076_v8  ;;  %2420 = vst [vmem:[#allocation19_spill] sm:$0xff] %v2079_v6 }
 0x10a   :  { %v195_v12 = vpop.f32.mrb[12].mxu0  ;;  %v268_v11 = vpop.f32.mrb[12].mxu1 }
 0x10b   :  { %v2081_v26 = vadd.f32 %v195_v12, %v55_v62  ;;  %v197_v57 = vpop.f32.mrb[13].mxu0  ;;  %v2084_v14 = vadd.f32 %v268_v11, %v2023_v58  ;;  %v270_v44 = vpop.f32.mrb[13].mxu1 }
 0x10c   :  { %v2086_v1 = vadd.f32 %v197_v57, %v59_v2  ;;  %v199_v52 = vpop.f32.mrb[14].mxu0  ;;  %v2089_v54 = vadd.f32 %v270_v44, %v2029_v61  ;;  %v272_v56 = vpop.f32.mrb[14].mxu1  ;;  %v166_v57 = vadd.f32 %v2025_v59, %v55_v62  ;;  %v168_v44 = vadd.f32 %v167_v63, %v59_v2 }
 0x10d   :  { %2421 = vst [vmem:[#allocation20_spill] sm:$0xff] %v2081_v26  ;;  %2422 = vst [vmem:[#allocation21_spill] sm:$0xff] %v2084_v14  ;;  %v2091_v8 = vadd.f32 %v199_v52, %v55_v62  ;;  %v201_v4 = vpop.f32.mrb[15].mxu0  ;;  %v2094_v6 = vadd.f32 %v272_v56, %v2023_v58  ;;  %v274_v12 = vpop.f32.mrb[15].mxu1 }
 0x10e   :  { %2423 = vst [vmem:[#allocation22_spill] sm:$0xff] %v2086_v1  ;;  %2424 = vst [vmem:[#allocation23_spill] sm:$0xff] %v2089_v54  ;;  %v2096_v26 = vadd.f32 %v201_v4, %v59_v2  ;;  %v2099_v11 = vadd.f32 %v274_v12, %v2029_v61  ;;  %v239_v1 = vadd.f32 %v2027_v60, %v2023_v58 }
 0x10f   :  { %2425 = vst [vmem:[#allocation24_spill] sm:$0xff] %v2091_v8  ;;  %2426 = vst [vmem:[#allocation25_spill] sm:$0xff] %v2094_v6  ;;  %v241_v54 = vadd.f32 %v240_v0, %v2029_v61 }
 0x110   :  { %2427 = vst [vmem:[#allocation26_spill] sm:$0xff] %v2096_v26  ;;  %2428 = vst [vmem:[#allocation27_spill] sm:$0xff] %v2099_v11 }
 0x112   :  { %v542_v52 = vpop.f32.mrb[16].mxu0  ;;  %v583_v8 = vpop.f32.mrb[16].mxu1 }
 0x113   :  { %v590_v14 = vadd.f32 %v542_v52, %v166_v57  ;;  %v592_v3 = vadd.f32 %v583_v8, %v239_v1  ;;  %v544_v56 = vpop.f32.mrb[17].mxu0  ;;  %v585_v6 = vpop.f32.mrb[17].mxu1 }
 0x114   :  { %v591_v55 = vadd.f32 %v544_v56, %v168_v44  ;;  %v593_v4 = vadd.f32 %v585_v6, %v241_v54  ;;  %v546_v26 = vpop.f32.mrb[18].mxu0  ;;  %v587_v53 = vpop.f32.mrb[18].mxu1 }
 0x115   :  { %v1524_v12 = vmul.f32 -1.442695, %v590_v14  ;;  %v547_v11 = vpop.f32.mrb[19].mxu0  ;;  %v588_v51 = vpop.f32.mrb[19].mxu1  ;;  %v1526_v58 = vmul.f32 -1.442695, %v592_v3 }
 0x116   :  { %v1525_v59 = vmul.f32 -1.442695, %v591_v55  ;;  %v2429_v11 = vmov 0  }
 0x117   :  { %1611 = vpow2.f32 %v1524_v12 }
 0x118   :  { %1613 = vpow2.f32 %v1525_v59 }
 0x119   :  { %1615 = vtanh.f32 %v593_v4 }
 0x11a   :  { %1617 = vpow2.f32 %v1526_v58 }
 0x121   :  { %v1612_v60 = vpop.eup %1611 }
 0x122   :  { %v603_v62 = vadd.f32 1.0, %v1612_v60  ;;  %v1614_v61 = vpop.eup %1613 }
 0x123   :  { %v604_v1 = vadd.f32 1.0, %v1614_v61  ;;  %v1616_v63 = vpop.eup %1615 }
 0x124   :  { %1619 = vrcp.f32 %v603_v62  ;;  %v1618_v0 = vpop.eup %1617 }
 0x125   :  { %1621 = vrcp.f32 %v604_v1  ;;  %v605_v26 = vadd.f32 1.0, %v1618_v0 }
 0x127   :  { %1623 = vrcp.f32 %v605_v26 }
 0x12e   :  { %v1620_v2 = vpop.eup %1619 }
 0x12f   :  { %v614_v8 = vmul.f32 %v1620_v2, %v1616_v63  ;;  %v1622_v53 = vpop.eup %1621 }
 0x130   :  { %v613_v6 = vmul.f32 0.0, %v1622_v53 }
 0x131   :  { %v1624_v55 = vpop.eup %1623 }
 0x132   :  { %v2105_v51 = vadd.f32 %v614_v8, %v613_v6 }
 0x134   :  { %1625 = vtanh.f32 %v2105_v51 }
 0x13e   :  { %v1626_v3 = vpop.eup %1625 }
 0x13f   :  { %v617_v14 = vmul.f32 %v1626_v3, %v1624_v55 }
 0x141   :  { %v625_v54 = vpack.c.bf16 %v617_v14, %v617_v14 }
 0x143   :  { %659 = vmatmul.mubr.bf16.vlgmr.msra.gmra.mrb[20].mxu0 %v625_v54  ;;  %700 = vmatmul.mubr.bf16.vlgmr.msra.gmra.mrb[20].mxu1 %v625_v54 }
 0x144   :  { %745 = vmatpush1.bf16.msra.mxu0 %v1865_v18  ;;  %786 = vmatpush1.bf16.msra.mxu1 %v1867_v19 }
 0x145   :  { %746 = vmatprep.subr.bf16.mxu0 %v1869_v20  ;;  %787 = vmatprep.subr.bf16.mxu1 %v1873_v21 }
 0x146   :  { %776 = vmatprep.mubr.bf16.mxu0 %v2429_v11  ;;  %817 = vmatprep.mubr.bf16.mxu1 %v2429_v11 }
 0x148   :  { %747 = vmatpush1.bf16.msra.mxu0 %v1877_v22  ;;  %788 = vmatpush1.bf16.msra.mxu1 %v1881_v23 }
 0x149   :  { %748 = vmatprep.subr.bf16.mxu0 %v1883_v24  ;;  %789 = vmatprep.subr.bf16.mxu1 %v1887_v25 }
 0x14c   :  { %749 = vmatpush1.bf16.msra.mxu0 %v1894_v27  ;;  %790 = vmatpush1.bf16.msra.mxu1 %v1896_v28 }
 0x14d   :  { %750 = vmatprep.subr.bf16.mxu0 %v1900_v29  ;;  %791 = vmatprep.subr.bf16.mxu1 %v1904_v30 }
 0x150   :  { %751 = vmatpush1.bf16.msra.mxu0 %v1908_v31  ;;  %792 = vmatpush1.bf16.msra.mxu1 %v1912_v32 }
 0x151   :  { %752 = vmatprep.subr.bf16.mxu0 %v1916_v33  ;;  %793 = vmatprep.subr.bf16.mxu1 %v1918_v34 }
 0x154   :  { %753 = vmatpush1.bf16.msra.mxu0 %v1925_v36  ;;  %794 = vmatpush1.bf16.msra.mxu1 %v1929_v37 }
 0x155   :  { %754 = vmatprep.subr.bf16.mxu0 %v1931_v38  ;;  %795 = vmatprep.subr.bf16.mxu1 %v1935_v39 }
 0x158   :  { %755 = vmatpush1.bf16.msra.mxu0 %v1941_v40  ;;  %796 = vmatpush1.bf16.msra.mxu1 %v1943_v41 }
 0x159   :  { %756 = vmatprep.subr.bf16.mxu0 %v1947_v42  ;;  %797 = vmatprep.subr.bf16.mxu1 %v1949_v43 }
 0x15c   :  { %757 = vmatpush1.bf16.msra.mxu0 %v1958_v45  ;;  %798 = vmatpush1.bf16.msra.mxu1 %v1960_v46 }
 0x15d   :  { %758 = vmatprep.subr.bf16.mxu0 %v1964_v47  ;;  %799 = vmatprep.subr.bf16.mxu1 %v1966_v48 }
 0x160   :  { %759 = vmatpush1.bf16.msra.mxu0 %v1972_v49  ;;  %800 = vmatpush1.bf16.msra.mxu1 %v1974_v50 }
 0x161   :  { %862 = vmatprep.subr.bf16.mxu0 %v1858_v15  ;;  %903 = vmatprep.subr.bf16.mxu1 %v1860_v16 }
 0x216   :  { %v660_v57 = vpop.f32.mrb[20].mxu0  ;;  %v701_v44 = vpop.f32.mrb[20].mxu1 }
 0x217   :  { %v708_v52 = vadd.f32 %v660_v57, %v2031_v5  ;;  %v710_v56 = vadd.f32 %v701_v44, %v2034_v7  ;;  %v662_v4 = vpop.f32.mrb[21].mxu0  ;;  %v703_v12 = vpop.f32.mrb[21].mxu1 }
 0x218   :  { %v709_v59 = vadd.f32 %v662_v4, %v2036_v9  ;;  %v711_v58 = vadd.f32 %v703_v12, %v2039_v10  ;;  %v664_v60 = vpop.f32.mrb[22].mxu0  ;;  %v705_v62 = vpop.f32.mrb[22].mxu1 }
 0x219   :  { %v1527_v61 = vmul.f32 -1.442695, %v708_v52  ;;  %v665_v1 = vpop.f32.mrb[23].mxu0  ;;  %v706_v63 = vpop.f32.mrb[23].mxu1  ;;  %v1529_v2 = vmul.f32 -1.442695, %v710_v56 }
 0x21a   :  { %v1528_v0 = vmul.f32 -1.442695, %v709_v59 }
 0x21b   :  { %1627 = vpow2.f32 %v1527_v61  ;;  %v2430_v61 = vld [vmem:[#allocation7_spill] sm:$0xff] }
 0x21c   :  { %1629 = vpow2.f32 %v1528_v0 }
 0x21d   :  { %1631 = vtanh.f32 %v711_v58 }
 0x21e   :  { %1633 = vpow2.f32 %v1529_v2 }
 0x225   :  { %v1628_v8 = vpop.eup %1627 }
 0x226   :  { %v721_v53 = vadd.f32 1.0, %v1628_v8  ;;  %v1630_v5 = vpop.eup %1629 }
 0x227   :  { %v722_v7 = vadd.f32 1.0, %v1630_v5  ;;  %v1632_v9 = vpop.eup %1631 }
 0x228   :  { %1635 = vrcp.f32 %v721_v53  ;;  %v1634_v26 = vpop.eup %1633 }
 0x229   :  { %1637 = vrcp.f32 %v722_v7  ;;  %v723_v3 = vadd.f32 1.0, %v1634_v26 }
 0x22b   :  { %1639 = vrcp.f32 %v723_v3 }
 0x232   :  { %v1636_v10 = vpop.eup %1635 }
 0x233   :  { %v732_v6 = vmul.f32 %v1636_v10, %v1632_v9  ;;  %v1638_v55 = vpop.eup %1637 }
 0x234   :  { %v731_v14 = vmul.f32 %v1638_v55, %v2105_v51 }
 0x235   :  { %v1640_v57 = vpop.eup %1639 }
 0x236   :  { %v2147_v54 = vadd.f32 %v732_v6, %v731_v14 }
 0x238   :  { %1641 = vtanh.f32 %v2147_v54 }
 0x242   :  { %v1642_v44 = vpop.eup %1641 }
 0x243   :  { %v735_v52 = vmul.f32 %v1642_v44, %v1640_v57 }
 0x245   :  { %v743_v56 = vpack.c.bf16 %v735_v52, %v735_v52 }
 0x247   :  { %777 = vmatmul.mubr.bf16.vlgmr.msra.gmra.mrb[24].mxu0 %v743_v56  ;;  %818 = vmatmul.mubr.bf16.vlgmr.msra.gmra.mrb[24].mxu1 %v743_v56 }
 0x248   :  { %863 = vmatpush1.bf16.msra.mxu0 %v1865_v18  ;;  %904 = vmatpush1.bf16.msra.mxu1 %v1867_v19 }
 0x249   :  { %864 = vmatprep.subr.bf16.mxu0 %v1869_v20  ;;  %905 = vmatprep.subr.bf16.mxu1 %v1873_v21 }
 0x24a   :  { %894 = vmatprep.mubr.bf16.mxu0 %v2429_v11  ;;  %935 = vmatprep.mubr.bf16.mxu1 %v2429_v11 }
 0x24c   :  { %865 = vmatpush1.bf16.msra.mxu0 %v1877_v22  ;;  %906 = vmatpush1.bf16.msra.mxu1 %v1881_v23 }
 0x24d   :  { %866 = vmatprep.subr.bf16.mxu0 %v1883_v24  ;;  %907 = vmatprep.subr.bf16.mxu1 %v1887_v25 }
 0x250   :  { %867 = vmatpush1.bf16.msra.mxu0 %v1894_v27  ;;  %908 = vmatpush1.bf16.msra.mxu1 %v1896_v28 }
 0x251   :  { %868 = vmatprep.subr.bf16.mxu0 %v1900_v29  ;;  %909 = vmatprep.subr.bf16.mxu1 %v1904_v30 }
 0x254   :  { %869 = vmatpush1.bf16.msra.mxu0 %v1908_v31  ;;  %910 = vmatpush1.bf16.msra.mxu1 %v1912_v32 }
 0x255   :  { %870 = vmatprep.subr.bf16.mxu0 %v1916_v33  ;;  %911 = vmatprep.subr.bf16.mxu1 %v1918_v34 }
 0x258   :  { %871 = vmatpush1.bf16.msra.mxu0 %v1925_v36  ;;  %912 = vmatpush1.bf16.msra.mxu1 %v1929_v37 }
 0x259   :  { %872 = vmatprep.subr.bf16.mxu0 %v1931_v38  ;;  %913 = vmatprep.subr.bf16.mxu1 %v1935_v39 }
 0x25c   :  { %873 = vmatpush1.bf16.msra.mxu0 %v1941_v40  ;;  %914 = vmatpush1.bf16.msra.mxu1 %v1943_v41 }
 0x25d   :  { %874 = vmatprep.subr.bf16.mxu0 %v1947_v42  ;;  %915 = vmatprep.subr.bf16.mxu1 %v1949_v43 }
 0x260   :  { %875 = vmatpush1.bf16.msra.mxu0 %v1958_v45  ;;  %916 = vmatpush1.bf16.msra.mxu1 %v1960_v46 }
 0x261   :  { %876 = vmatprep.subr.bf16.mxu0 %v1964_v47  ;;  %917 = vmatprep.subr.bf16.mxu1 %v1966_v48 }
 0x264   :  { %877 = vmatpush1.bf16.msra.mxu0 %v1972_v49  ;;  %918 = vmatpush1.bf16.msra.mxu1 %v1974_v50 }
 0x265   :  { %980 = vmatprep.subr.bf16.mxu0 %v1858_v15  ;;  %1021 = vmatprep.subr.bf16.mxu1 %v1860_v16 }
 0x31a   :  { %v778_v51 = vpop.f32.mrb[24].mxu0  ;;  %v819_v4 = vpop.f32.mrb[24].mxu1 }
 0x31b   :  { %v826_v12 = vadd.f32 %v778_v51, %v2041_v13  ;;  %v828_v59 = vadd.f32 %v819_v4, %v2044_v17  ;;  %v780_v58 = vpop.f32.mrb[25].mxu0  ;;  %v821_v60 = vpop.f32.mrb[25].mxu1 }
 0x31c   :  { %v827_v62 = vadd.f32 %v780_v58, %v2046_v35  ;;  %v829_v1 = vadd.f32 %v821_v60, %v2430_v61  ;;  %v782_v63 = vpop.f32.mrb[26].mxu0  ;;  %v823_v0 = vpop.f32.mrb[26].mxu1  ;;  %v2432_v60 = vld [vmem:[#allocation9_spill] sm:$0xff] }
 0x31d   :  { %v1530_v2 = vmul.f32 -1.442695, %v826_v12  ;;  %v783_v8 = vpop.f32.mrb[27].mxu0  ;;  %v824_v53 = vpop.f32.mrb[27].mxu1  ;;  %v1532_v7 = vmul.f32 -1.442695, %v828_v59 }
 0x31e   :  { %v1531_v5 = vmul.f32 -1.442695, %v827_v62  ;;  %v2431_v59 = vld [vmem:[#allocation8_spill] sm:$0xff]  ;;  %v2433_v63 = vld [vmem:[#allocation10_spill] sm:$0xff] }
 0x31f   :  { %1643 = vpow2.f32 %v1530_v2  ;;  %v2434_v2 = vld [vmem:[#allocation11_spill] sm:$0xff] }
 0x320   :  { %1645 = vpow2.f32 %v1531_v5 }
 0x321   :  { %1647 = vtanh.f32 %v829_v1 }
 0x322   :  { %1649 = vpow2.f32 %v1532_v7 }
 0x329   :  { %v1644_v9 = vpop.eup %1643 }
 0x32a   :  { %v839_v26 = vadd.f32 1.0, %v1644_v9  ;;  %v1646_v13 = vpop.eup %1645 }
 0x32b   :  { %v840_v17 = vadd.f32 1.0, %v1646_v13  ;;  %v1648_v35 = vpop.eup %1647 }
 0x32c   :  { %1651 = vrcp.f32 %v839_v26  ;;  %v1650_v10 = vpop.eup %1649 }
 0x32d   :  { %1653 = vrcp.f32 %v840_v17  ;;  %v841_v14 = vadd.f32 1.0, %v1650_v10 }
 0x32f   :  { %1655 = vrcp.f32 %v841_v14 }
 0x336   :  { %v1652_v6 = vpop.eup %1651 }
 0x337   :  { %v850_v55 = vmul.f32 %v1652_v6, %v1648_v35  ;;  %v1654_v3 = vpop.eup %1653 }
 0x338   :  { %v849_v57 = vmul.f32 %v1654_v3, %v2147_v54 }
 0x339   :  { %v1656_v52 = vpop.eup %1655 }
 0x33a   :  { %v2189_v44 = vadd.f32 %v850_v55, %v849_v57 }
 0x33c   :  { %1657 = vtanh.f32 %v2189_v44 }
 0x346   :  { %v1658_v56 = vpop.eup %1657 }
 0x347   :  { %v853_v51 = vmul.f32 %v1658_v56, %v1656_v52 }
 0x349   :  { %v861_v4 = vpack.c.bf16 %v853_v51, %v853_v51 }
 0x34b   :  { %895 = vmatmul.mubr.bf16.vlgmr.msra.gmra.mrb[28].mxu0 %v861_v4  ;;  %936 = vmatmul.mubr.bf16.vlgmr.msra.gmra.mrb[28].mxu1 %v861_v4 }
 0x34c   :  { %981 = vmatpush1.bf16.msra.mxu0 %v1865_v18  ;;  %1022 = vmatpush1.bf16.msra.mxu1 %v1867_v19 }
 0x34d   :  { %982 = vmatprep.subr.bf16.mxu0 %v1869_v20  ;;  %1023 = vmatprep.subr.bf16.mxu1 %v1873_v21 }
 0x34e   :  { %1012 = vmatprep.mubr.bf16.mxu0 %v2429_v11  ;;  %1053 = vmatprep.mubr.bf16.mxu1 %v2429_v11 }
 0x350   :  { %983 = vmatpush1.bf16.msra.mxu0 %v1877_v22  ;;  %1024 = vmatpush1.bf16.msra.mxu1 %v1881_v23 }
 0x351   :  { %984 = vmatprep.subr.bf16.mxu0 %v1883_v24  ;;  %1025 = vmatprep.subr.bf16.mxu1 %v1887_v25 }
 0x354   :  { %985 = vmatpush1.bf16.msra.mxu0 %v1894_v27  ;;  %1026 = vmatpush1.bf16.msra.mxu1 %v1896_v28 }
 0x355   :  { %986 = vmatprep.subr.bf16.mxu0 %v1900_v29  ;;  %1027 = vmatprep.subr.bf16.mxu1 %v1904_v30 }
 0x358   :  { %987 = vmatpush1.bf16.msra.mxu0 %v1908_v31  ;;  %1028 = vmatpush1.bf16.msra.mxu1 %v1912_v32 }
 0x359   :  { %988 = vmatprep.subr.bf16.mxu0 %v1916_v33  ;;  %1029 = vmatprep.subr.bf16.mxu1 %v1918_v34 }
 0x35c   :  { %989 = vmatpush1.bf16.msra.mxu0 %v1925_v36  ;;  %1030 = vmatpush1.bf16.msra.mxu1 %v1929_v37 }
 0x35d   :  { %990 = vmatprep.subr.bf16.mxu0 %v1931_v38  ;;  %1031 = vmatprep.subr.bf16.mxu1 %v1935_v39 }
 0x360   :  { %991 = vmatpush1.bf16.msra.mxu0 %v1941_v40  ;;  %1032 = vmatpush1.bf16.msra.mxu1 %v1943_v41 }
 0x361   :  { %992 = vmatprep.subr.bf16.mxu0 %v1947_v42  ;;  %1033 = vmatprep.subr.bf16.mxu1 %v1949_v43 }
 0x364   :  { %993 = vmatpush1.bf16.msra.mxu0 %v1958_v45  ;;  %1034 = vmatpush1.bf16.msra.mxu1 %v1960_v46 }
 0x365   :  { %994 = vmatprep.subr.bf16.mxu0 %v1964_v47  ;;  %1035 = vmatprep.subr.bf16.mxu1 %v1966_v48 }
 0x368   :  { %995 = vmatpush1.bf16.msra.mxu0 %v1972_v49  ;;  %1036 = vmatpush1.bf16.msra.mxu1 %v1974_v50 }
 0x369   :  { %1098 = vmatprep.subr.bf16.mxu0 %v1858_v15  ;;  %1139 = vmatprep.subr.bf16.mxu1 %v1860_v16 }
 0x41e   :  { %v896_v54 = vpop.f32.mrb[28].mxu0  ;;  %v937_v12 = vpop.f32.mrb[28].mxu1 }
 0x41f   :  { %v944_v58 = vadd.f32 %v896_v54, %v2431_v59  ;;  %v946_v62 = vadd.f32 %v937_v12, %v2432_v60  ;;  %v898_v61 = vpop.f32.mrb[29].mxu0  ;;  %v939_v1 = vpop.f32.mrb[29].mxu1 }
 0x420   :  { %v945_v0 = vadd.f32 %v898_v61, %v2433_v63  ;;  %v947_v8 = vadd.f32 %v939_v1, %v2434_v2  ;;  %v900_v53 = vpop.f32.mrb[30].mxu0  ;;  %v941_v5 = vpop.f32.mrb[30].mxu1 }
 0x421   :  { %v1533_v7 = vmul.f32 -1.442695, %v944_v58  ;;  %v901_v9 = vpop.f32.mrb[31].mxu0  ;;  %v942_v26 = vpop.f32.mrb[31].mxu1  ;;  %v1535_v16 = vmul.f32 -1.442695, %v946_v62 }
 0x422   :  { %v1534_v15 = vmul.f32 -1.442695, %v945_v0 }
 0x423   :  { %1659 = vpow2.f32 %v1533_v7 }
 0x424   :  { %1661 = vpow2.f32 %v1534_v15 }
 0x425   :  { %1663 = vtanh.f32 %v947_v8 }
 0x426   :  { %1665 = vpow2.f32 %v1535_v16 }
 0x42d   :  { %v1660_v13 = vpop.eup %1659 }
 0x42e   :  { %v957_v17 = vadd.f32 1.0, %v1660_v13  ;;  %v1662_v35 = vpop.eup %1661  ;;  %v2280_v13 = vld [vmem:[#allocation4] ss:$16 sps:$4 sm:$0xff]  }
 0x42f   :  { %v958_v10 = vadd.f32 1.0, %v1662_v35  ;;  %v1664_v6 = vpop.eup %1663  ;;  %v2286_v35 = vld [vmem:[#allocation4 + $0x24] ss:$16 sps:$4 sm:$0xff]  }
 0x430   :  { %1667 = vrcp.f32 %v957_v17  ;;  %v1666_v55 = vpop.eup %1665  ;;  %v2283_v17 = vld [vmem:[#allocation4 + $0x8] ss:$16 sps:$4 sm:$0xff]  }
 0x431   :  { %1669 = vrcp.f32 %v958_v10  ;;  %v959_v52 = vadd.f32 1.0, %v1666_v55  ;;  %v2289_v10 = vld [vmem:[#allocation4 + $0x2c] ss:$16 sps:$4 sm:$0xff]   ;;  %v2297_v55 = vld [vmem:[#allocation4 + $0x28] ss:$16 sps:$4 sm:$0xff]  }
 0x433   :  { %1671 = vrcp.f32 %v959_v52  ;;  %v2309_v52 = vld [vmem:[#allocation4 + $0x48] ss:$16 sps:$4 sm:$0xff]  }
 0x43a   :  { %v1668_v3 = vpop.eup %1667 }
 0x43b   :  { %v968_v14 = vmul.f32 %v1668_v3, %v1664_v6  ;;  %v1670_v57 = vpop.eup %1669  ;;  %v2294_v6 = vld [vmem:[#allocation4 + $0x20] ss:$16 sps:$4 sm:$0xff]   ;;  %v2300_v3 = vld [vmem:[#allocation4 + $0x44] ss:$16 sps:$4 sm:$0xff]  }
 0x43c   :  { %v967_v56 = vmul.f32 %v1670_v57, %v2189_v44  ;;  %v2306_v57 = vld [vmem:[#allocation4 + $0x40] ss:$16 sps:$4 sm:$0xff]  }
 0x43d   :  { %v1672_v4 = vpop.eup %1671 }
 0x43e   :  { %v2231_v51 = vadd.f32 %v968_v14, %v967_v56  ;;  %v2303_v14 = vld [vmem:[#allocation4 + $0x4c] ss:$16 sps:$4 sm:$0xff]   ;;  %v2312_v56 = vld [vmem:[#allocation4 + $0x64] ss:$16 sps:$4 sm:$0xff]  }
 0x440   :  { %1673 = vtanh.f32 %v2231_v51 }
 0x44a   :  { %v1674_v54 = vpop.eup %1673 }
 0x44b   :  { %v971_v12 = vmul.f32 %v1674_v54, %v1672_v4  ;;  %v2318_v4 = vld [vmem:[#allocation4 + $0x60] ss:$16 sps:$4 sm:$0xff]   ;;  %v2321_v54 = vld [vmem:[#allocation4 + $0x68] ss:$16 sps:$4 sm:$0xff]  }
 0x44d   :  { %v979_v59 = vpack.c.bf16 %v971_v12, %v971_v12  ;;  %v2324_v12 = vld [vmem:[#allocation4 + $0x84] ss:$16 sps:$4 sm:$0xff]  }
 0x44f   :  { %1013 = vmatmul.mubr.bf16.vlgmr.msra.gmra.mrb[32].mxu0 %v979_v59  ;;  %1054 = vmatmul.mubr.bf16.vlgmr.msra.gmra.mrb[32].mxu1 %v979_v59  ;;  %v2327_v59 = vld [vmem:[#allocation4 + $0x8c] ss:$16 sps:$4 sm:$0xff]  }
 0x450   :  { %1099 = vmatpush1.bf16.msra.mxu0 %v1865_v18  ;;  %1140 = vmatpush1.bf16.msra.mxu1 %v1867_v19  ;;  %v2266_v18 = vld [vmem:[#allocation4 + $0x4] ss:$16 sps:$4 sm:$0xff]   ;;  %v2269_v19 = vld [vmem:[#allocation4 + $0xc] ss:$16 sps:$4 sm:$0xff]  }
 0x451   :  { %1100 = vmatprep.subr.bf16.mxu0 %v1869_v20  ;;  %1141 = vmatprep.subr.bf16.mxu1 %v1873_v21 }
 0x452   :  { %1130 = vmatprep.mubr.bf16.mxu0 %v2429_v11  ;;  %1171 = vmatprep.mubr.bf16.mxu1 %v2429_v11 }
 0x454   :  { %1101 = vmatpush1.bf16.msra.mxu0 %v1877_v22  ;;  %1142 = vmatpush1.bf16.msra.mxu1 %v1881_v23  ;;  %v2435_v22 = vld [vmem:[#allocation12_spill] sm:$0xff] }
 0x455   :  { %1102 = vmatprep.subr.bf16.mxu0 %v1883_v24  ;;  %1143 = vmatprep.subr.bf16.mxu1 %v1887_v25  ;;  %v2436_v24 = vld [vmem:[#allocation13_spill] sm:$0xff] }
 0x458   :  { %1103 = vmatpush1.bf16.msra.mxu0 %v1894_v27  ;;  %1144 = vmatpush1.bf16.msra.mxu1 %v1896_v28 }
 0x459   :  { %1104 = vmatprep.subr.bf16.mxu0 %v1900_v29  ;;  %1145 = vmatprep.subr.bf16.mxu1 %v1904_v30  ;;  %v2437_v29 = vld [vmem:[#allocation14_spill] sm:$0xff] }
 0x45c   :  { %1105 = vmatpush1.bf16.msra.mxu0 %v1908_v31  ;;  %1146 = vmatpush1.bf16.msra.mxu1 %v1912_v32  ;;  %v2438_v31 = vld [vmem:[#allocation15_spill] sm:$0xff] }
 0x45d   :  { %1106 = vmatprep.subr.bf16.mxu0 %v1916_v33  ;;  %1147 = vmatprep.subr.bf16.mxu1 %v1918_v34 }
 0x460   :  { %1107 = vmatpush1.bf16.msra.mxu0 %v1925_v36  ;;  %1148 = vmatpush1.bf16.msra.mxu1 %v1929_v37 }
 0x461   :  { %1108 = vmatprep.subr.bf16.mxu0 %v1931_v38  ;;  %1149 = vmatprep.subr.bf16.mxu1 %v1935_v39 }
 0x464   :  { %1109 = vmatpush1.bf16.msra.mxu0 %v1941_v40  ;;  %1150 = vmatpush1.bf16.msra.mxu1 %v1943_v41 }
 0x465   :  { %1110 = vmatprep.subr.bf16.mxu0 %v1947_v42  ;;  %1151 = vmatprep.subr.bf16.mxu1 %v1949_v43 }
 0x468   :  { %1111 = vmatpush1.bf16.msra.mxu0 %v1958_v45  ;;  %1152 = vmatpush1.bf16.msra.mxu1 %v1960_v46 }
 0x469   :  { %1112 = vmatprep.subr.bf16.mxu0 %v1964_v47  ;;  %1153 = vmatprep.subr.bf16.mxu1 %v1966_v48 }
 0x46c   :  { %1113 = vmatpush1.bf16.msra.mxu0 %v1972_v49  ;;  %1154 = vmatpush1.bf16.msra.mxu1 %v1974_v50 }
 0x46d   :  { %1216 = vmatprep.subr.bf16.mxu0 %v2266_v18  ;;  %1257 = vmatprep.subr.bf16.mxu1 %v2269_v19 }
 0x522   :  { %v1014_v20 = vpop.f32.mrb[32].mxu0  ;;  %v1055_v21 = vpop.f32.mrb[32].mxu1 }
 0x523   :  { %v1062_v23 = vadd.f32 %v1014_v20, %v2435_v22  ;;  %v1064_v25 = vadd.f32 %v1055_v21, %v2436_v24  ;;  %v1016_v27 = vpop.f32.mrb[33].mxu0  ;;  %v1057_v28 = vpop.f32.mrb[33].mxu1  ;;  %v2330_v20 = vld [vmem:[#allocation4 + $0x80] ss:$16 sps:$4 sm:$0xff]   ;;  %v2333_v21 = vld [vmem:[#allocation4 + $0x88] ss:$16 sps:$4 sm:$0xff]  }
 0x524   :  { %v1063_v30 = vadd.f32 %v1016_v27, %v2437_v29  ;;  %v1065_v32 = vadd.f32 %v1057_v28, %v2438_v31  ;;  %v1018_v33 = vpop.f32.mrb[34].mxu0  ;;  %v1059_v34 = vpop.f32.mrb[34].mxu1  ;;  %v2336_v22 = vld [vmem:[#allocation4 + $0xa4] ss:$16 sps:$4 sm:$0xff]   ;;  %v2441_v27 = vld [vmem:[#allocation18_spill] sm:$0xff] }
 0x525   :  { %v1536_v36 = vmul.f32 -1.442695, %v1062_v23  ;;  %v1019_v37 = vpop.f32.mrb[35].mxu0  ;;  %v1060_v38 = vpop.f32.mrb[35].mxu1  ;;  %v1538_v44 = vmul.f32 -1.442695, %v1064_v25 }
 0x526   :  { %v1537_v39 = vmul.f32 -1.442695, %v1063_v30  ;;  %v2339_v23 = vld [vmem:[#allocation4 + $0xac] ss:$16 sps:$4 sm:$0xff]   ;;  %v2440_v24 = vld [vmem:[#allocation17_spill] sm:$0xff]  ;;  %v2442_v28 = vld [vmem:[#allocation19_spill] sm:$0xff] }
 0x527   :  { %1675 = vpow2.f32 %v1536_v36 }
 0x528   :  { %1677 = vpow2.f32 %v1537_v39 }
 0x529   :  { %1679 = vtanh.f32 %v1065_v32 }
 0x52a   :  { %1681 = vpow2.f32 %v1538_v44 }
 0x531   :  { %v1676_v58 = vpop.eup %1675 }
 0x532   :  { %v1075_v60 = vadd.f32 1.0, %v1676_v58  ;;  %v1678_v62 = vpop.eup %1677 }
 0x533   :  { %v1076_v61 = vadd.f32 1.0, %v1678_v62  ;;  %v1680_v1 = vpop.eup %1679 }
 0x534   :  { %1683 = vrcp.f32 %v1075_v60  ;;  %v1682_v63 = vpop.eup %1681 }
 0x535   :  { %1685 = vrcp.f32 %v1076_v61  ;;  %v1077_v53 = vadd.f32 1.0, %v1682_v63 }
 0x537   :  { %1687 = vrcp.f32 %v1077_v53  ;;  %v1763_v53 = vld [vmem:[#allocation4 + $0xc4] ss:$16 sps:$4 sm:$0xff]  }
 0x53e   :  { %v1684_v0 = vpop.eup %1683 }
 0x53f   :  { %v1086_v2 = vmul.f32 %v1684_v0, %v1680_v1  ;;  %v1686_v8 = vpop.eup %1685 }
 0x540   :  { %v1085_v5 = vmul.f32 %v1686_v8, %v2231_v51  ;;  %v2315_v51 = vld [vmem:[#allocation4 + $0x6c] ss:$16 sps:$4 sm:$0xff]   ;;  %v1762_v8 = vld [vmem:[#allocation4 + $0xa8] ss:$16 sps:$4 sm:$0xff]  }
 0x541   :  { %v1688_v9 = vpop.eup %1687 }
 0x542   :  { %v2277_v7 = vadd.f32 %v1086_v2, %v1085_v5  ;;  %v1764_v5 = vld [vmem:[#allocation4 + $0xcc] ss:$16 sps:$4 sm:$0xff]  }
 0x544   :  { %1689 = vtanh.f32 %v2277_v7 }
 0x54e   :  { %v1690_v26 = vpop.eup %1689 }
 0x54f   :  { %v1089_v15 = vmul.f32 %v1690_v26, %v1688_v9  ;;  %v1766_v9 = vld [vmem:[#allocation4 + $0xc8] ss:$16 sps:$4 sm:$0xff]   ;;  %v1767_v26 = vld [vmem:[#allocation4 + $0xe4] ss:$16 sps:$4 sm:$0xff]  }
 0x551   :  { %v1097_v16 = vpack.c.bf16 %v1089_v15, %v1089_v15  ;;  %v1768_v15 = vld [vmem:[#allocation4 + $0xec] ss:$16 sps:$4 sm:$0xff]  }
 0x553   :  { %1131 = vmatmul.mubr.bf16.vlgmr.msra.gmra.mrb[36].mxu0 %v1097_v16  ;;  %1172 = vmatmul.mubr.bf16.vlgmr.msra.gmra.mrb[36].mxu1 %v1097_v16  ;;  %v1769_v16 = vld [vmem:[#allocation4 + $0xe0] ss:$16 sps:$4 sm:$0xff]  }
 0x554   :  { %1217 = vmatpush1.bf16.msra.mxu0 %v2280_v13  ;;  %1258 = vmatpush1.bf16.msra.mxu1 %v2283_v17 }
 0x555   :  { %1218 = vmatprep.subr.bf16.mxu0 %v2286_v35  ;;  %1259 = vmatprep.subr.bf16.mxu1 %v2289_v10 }
 0x556   :  { %1248 = vmatprep.mubr.bf16.mxu0 %v2429_v11  ;;  %1289 = vmatprep.mubr.bf16.mxu1 %v2429_v11 }
 0x558   :  { %1219 = vmatpush1.bf16.msra.mxu0 %v2294_v6  ;;  %1260 = vmatpush1.bf16.msra.mxu1 %v2297_v55 }
 0x559   :  { %1220 = vmatprep.subr.bf16.mxu0 %v2300_v3  ;;  %1261 = vmatprep.subr.bf16.mxu1 %v2303_v14 }
 0x55c   :  { %1221 = vmatpush1.bf16.msra.mxu0 %v2306_v57  ;;  %1262 = vmatpush1.bf16.msra.mxu1 %v2309_v52 }
 0x55d   :  { %1222 = vmatprep.subr.bf16.mxu0 %v2312_v56  ;;  %1263 = vmatprep.subr.bf16.mxu1 %v2315_v51 }
 0x560   :  { %1223 = vmatpush1.bf16.msra.mxu0 %v2318_v4  ;;  %1264 = vmatpush1.bf16.msra.mxu1 %v2321_v54 }
 0x561   :  { %1224 = vmatprep.subr.bf16.mxu0 %v2324_v12  ;;  %1265 = vmatprep.subr.bf16.mxu1 %v2327_v59 }
 0x564   :  { %1225 = vmatpush1.bf16.msra.mxu0 %v2330_v20  ;;  %1266 = vmatpush1.bf16.msra.mxu1 %v2333_v21 }
 0x565   :  { %1226 = vmatprep.subr.bf16.mxu0 %v2336_v22  ;;  %1267 = vmatprep.subr.bf16.mxu1 %v2339_v23 }
 0x568   :  { %1227 = vmatpush1.bf16.msra.mxu0 %v1941_v40  ;;  %1268 = vmatpush1.bf16.msra.mxu1 %v1943_v41 }
 0x569   :  { %1228 = vmatprep.subr.bf16.mxu0 %v1947_v42  ;;  %1269 = vmatprep.subr.bf16.mxu1 %v1949_v43  ;;  %v2439_v42 = vld [vmem:[#allocation16_spill] sm:$0xff] }
 0x56c   :  { %1229 = vmatpush1.bf16.msra.mxu0 %v1958_v45  ;;  %1270 = vmatpush1.bf16.msra.mxu1 %v1960_v46 }
 0x56d   :  { %1230 = vmatprep.subr.bf16.mxu0 %v1964_v47  ;;  %1271 = vmatprep.subr.bf16.mxu1 %v1966_v48 }
 0x570   :  { %1231 = vmatpush1.bf16.msra.mxu0 %v1972_v49  ;;  %1272 = vmatpush1.bf16.msra.mxu1 %v1974_v50 }
 0x571   :  { %1334 = vmatprep.subr.bf16.mxu0 %v2266_v18  ;;  %1375 = vmatprep.subr.bf16.mxu1 %v2269_v19 }
 0x626   :  { %v1132_v40 = vpop.f32.mrb[36].mxu0  ;;  %v1173_v41 = vpop.f32.mrb[36].mxu1 }
 0x627   :  { %v1180_v43 = vadd.f32 %v1132_v40, %v2439_v42  ;;  %v1182_v45 = vadd.f32 %v1173_v41, %v2440_v24  ;;  %v1134_v25 = vpop.f32.mrb[37].mxu0  ;;  %v1175_v46 = vpop.f32.mrb[37].mxu1 }
 0x628   :  { %v1181_v47 = vadd.f32 %v1134_v25, %v2441_v27  ;;  %v1183_v48 = vadd.f32 %v1175_v46, %v2442_v28  ;;  %v1136_v29 = vpop.f32.mrb[38].mxu0  ;;  %v1177_v49 = vpop.f32.mrb[38].mxu1 }
 0x629   :  { %v1539_v30 = vmul.f32 -1.442695, %v1180_v43  ;;  %v1137_v50 = vpop.f32.mrb[39].mxu0  ;;  %v1178_v31 = vpop.f32.mrb[39].mxu1  ;;  %v1541_v19 = vmul.f32 -1.442695, %v1182_v45 }
 0x62a   :  { %v1540_v18 = vmul.f32 -1.442695, %v1181_v47 }
 0x62b   :  { %1691 = vpow2.f32 %v1539_v30 }
 0x62c   :  { %1693 = vpow2.f32 %v1540_v18 }
 0x62d   :  { %1695 = vtanh.f32 %v1183_v48 }
 0x62e   :  { %1697 = vpow2.f32 %v1541_v19  ;;  %v2447_v19 = vld [vmem:[#allocation24_spill] sm:$0xff] }
 0x635   :  { %v1692_v32 = vpop.eup %1691 }
 0x636   :  { %v1193_v33 = vadd.f32 1.0, %v1692_v32  ;;  %v1694_v34 = vpop.eup %1693 }
 0x637   :  { %v1194_v36 = vadd.f32 1.0, %v1694_v34  ;;  %v1696_v37 = vpop.eup %1695 }
 0x638   :  { %1699 = vrcp.f32 %v1193_v33  ;;  %v1698_v38 = vpop.eup %1697  ;;  %v2448_v33 = vld [vmem:[#allocation25_spill] sm:$0xff] }
 0x639   :  { %1701 = vrcp.f32 %v1194_v36  ;;  %v1195_v60 = vadd.f32 1.0, %v1698_v38  ;;  %v2449_v38 = vld [vmem:[#allocation26_spill] sm:$0xff] }
 0x63b   :  { %1703 = vrcp.f32 %v1195_v60 }
 0x642   :  { %v1700_v39 = vpop.eup %1699 }
 0x643   :  { %v1204_v44 = vmul.f32 %v1700_v39, %v1696_v37  ;;  %v1702_v58 = vpop.eup %1701 }
 0x644   :  { %v1203_v62 = vmul.f32 %v1702_v58, %v2277_v7  ;;  %v1765_v7 = vld [vmem:[#allocation4 + $0xc0] ss:$16 sps:$4 sm:$0xff]  }
 0x645   :  { %v1704_v1 = vpop.eup %1703 }
 0x646   :  { %v2359_v61 = vadd.f32 %v1204_v44, %v1203_v62  ;;  %v2450_v44 = vld [vmem:[#allocation27_spill] sm:$0xff] }
 0x648   :  { %1705 = vtanh.f32 %v2359_v61 }
 0x652   :  { %v1706_v63 = vpop.eup %1705 }
 0x653   :  { %v1207_v0 = vmul.f32 %v1706_v63, %v1704_v1 }
 0x655   :  { %v1215_v2 = vpack.c.bf16 %v1207_v0, %v1207_v0 }
 0x657   :  { %1249 = vmatmul.mubr.bf16.vlgmr.msra.gmra.mrb[40].mxu0 %v1215_v2  ;;  %1290 = vmatmul.mubr.bf16.vlgmr.msra.gmra.mrb[40].mxu1 %v1215_v2 }
 0x658   :  { %1335 = vmatpush1.bf16.msra.mxu0 %v2280_v13  ;;  %1376 = vmatpush1.bf16.msra.mxu1 %v2283_v17  ;;  %v1770_v13 = vld [vmem:[#allocation4 + $0xe8] ss:$16 sps:$4 sm:$0xff]  }
 0x659   :  { %1336 = vmatprep.subr.bf16.mxu0 %v2286_v35  ;;  %1377 = vmatprep.subr.bf16.mxu1 %v2289_v10  ;;  %v2443_v10 = vld [vmem:[#allocation20_spill] sm:$0xff] }
 0x65a   :  { %1366 = vmatprep.mubr.bf16.mxu0 %v2429_v11  ;;  %1407 = vmatprep.mubr.bf16.mxu1 %v2429_v11  ;;  %v1761_v11 = vld [vmem:[#allocation4 + $0xa0] ss:$16 sps:$4 sm:$0xff]  }
 0x65c   :  { %1337 = vmatpush1.bf16.msra.mxu0 %v2294_v6  ;;  %1378 = vmatpush1.bf16.msra.mxu1 %v2297_v55  ;;  %v2444_v55 = vld [vmem:[#allocation21_spill] sm:$0xff] }
 0x65d   :  { %1338 = vmatprep.subr.bf16.mxu0 %v2300_v3  ;;  %1379 = vmatprep.subr.bf16.mxu1 %v2303_v14 }
 0x660   :  { %1339 = vmatpush1.bf16.msra.mxu0 %v2306_v57  ;;  %1380 = vmatpush1.bf16.msra.mxu1 %v2309_v52  ;;  %v2445_v52 = vld [vmem:[#allocation22_spill] sm:$0xff] }
 0x661   :  { %1340 = vmatprep.subr.bf16.mxu0 %v2312_v56  ;;  %1381 = vmatprep.subr.bf16.mxu1 %v2315_v51  ;;  %v2446_v51 = vld [vmem:[#allocation23_spill] sm:$0xff] }
 0x664   :  { %1341 = vmatpush1.bf16.msra.mxu0 %v2318_v4  ;;  %1382 = vmatpush1.bf16.msra.mxu1 %v2321_v54 }
 0x665   :  { %1342 = vmatprep.subr.bf16.mxu0 %v2324_v12  ;;  %1383 = vmatprep.subr.bf16.mxu1 %v2327_v59 }
 0x668   :  { %1343 = vmatpush1.bf16.msra.mxu0 %v2330_v20  ;;  %1384 = vmatpush1.bf16.msra.mxu1 %v2333_v21 }
 0x669   :  { %1344 = vmatprep.subr.bf16.mxu0 %v2336_v22  ;;  %1385 = vmatprep.subr.bf16.mxu1 %v2339_v23 }
 0x66c   :  { %1345 = vmatpush1.bf16.msra.mxu0 %v1761_v11  ;;  %1386 = vmatpush1.bf16.msra.mxu1 %v1762_v8 }
 0x66d   :  { %1346 = vmatprep.subr.bf16.mxu0 %v1763_v53  ;;  %1387 = vmatprep.subr.bf16.mxu1 %v1764_v5 }
 0x670   :  { %1347 = vmatpush1.bf16.msra.mxu0 %v1765_v7  ;;  %1388 = vmatpush1.bf16.msra.mxu1 %v1766_v9 }
 0x671   :  { %1348 = vmatprep.subr.bf16.mxu0 %v1767_v26  ;;  %1389 = vmatprep.subr.bf16.mxu1 %v1768_v15 }
 0x674   :  { %1349 = vmatpush1.bf16.msra.mxu0 %v1769_v16  ;;  %1390 = vmatpush1.bf16.msra.mxu1 %v1770_v13 }
 0x72a   :  { %v1250_v17 = vpop.f32.mrb[40].mxu0  ;;  %v1291_v35 = vpop.f32.mrb[40].mxu1 }
 0x72b   :  { %v1298_v6 = vadd.f32 %v1250_v17, %v2443_v10  ;;  %v1300_v3 = vadd.f32 %v1291_v35, %v2444_v55  ;;  %v1252_v14 = vpop.f32.mrb[41].mxu0  ;;  %v1293_v57 = vpop.f32.mrb[41].mxu1  ;;  %v1548_v55 = vld [vmem:[%s2403_s4] ss:$0 sm:$0xff] }
 0x72c   :  { %v1299_v56 = vadd.f32 %v1252_v14, %v2445_v52  ;;  %v1301_v4 = vadd.f32 %v1293_v57, %v2446_v51  ;;  %v1254_v54 = vpop.f32.mrb[42].mxu0  ;;  %v1295_v12 = vpop.f32.mrb[42].mxu1  ;;  %v1549_v57 = vld [vmem:[#allocation3] ss:$0 sm:$0xff] }
 0x72d   :  { %v1542_v59 = vmul.f32 -1.442695, %v1298_v6  ;;  %v1255_v20 = vpop.f32.mrb[43].mxu0  ;;  %v1296_v21 = vpop.f32.mrb[43].mxu1  ;;  %v1544_v23 = vmul.f32 -1.442695, %v1300_v3 }
 0x72e   :  { %v1543_v22 = vmul.f32 -1.442695, %v1299_v56 }
 0x72f   :  { %1707 = vpow2.f32 %v1542_v59 }
 0x730   :  { %1709 = vpow2.f32 %v1543_v22 }
 0x731   :  { %1711 = vtanh.f32 %v1301_v4 }
 0x732   :  { %1713 = vpow2.f32 %v1544_v23 }
 0x739   :  { %v1708_v40 = vpop.eup %1707 }
 0x73a   :  { %v1311_v41 = vadd.f32 1.0, %v1708_v40  ;;  %v1710_v42 = vpop.eup %1709 }
 0x73b   :  { %v1312_v43 = vadd.f32 1.0, %v1710_v42  ;;  %v1712_v24 = vpop.eup %1711 }
 0x73c   :  { %1715 = vrcp.f32 %v1311_v41  ;;  %v1714_v45 = vpop.eup %1713 }
 0x73d   :  { %1717 = vrcp.f32 %v1312_v43  ;;  %v1313_v47 = vadd.f32 1.0, %v1714_v45 }
 0x73f   :  { %1719 = vrcp.f32 %v1313_v47 }
 0x746   :  { %v1716_v25 = vpop.eup %1715 }
 0x747   :  { %v1322_v46 = vmul.f32 %v1716_v25, %v1712_v24  ;;  %v1718_v27 = vpop.eup %1717 }
 0x748   :  { %v1321_v28 = vmul.f32 %v1718_v27, %v2359_v61 }
 0x749   :  { %v1720_v29 = vpop.eup %1719 }
 0x74a   :  { %v1323_v48 = vadd.f32 %v1322_v46, %v1321_v28 }
 0x74c   :  { %1721 = vtanh.f32 %v1323_v48 }
 0x756   :  { %v1722_v49 = vpop.eup %1721 }
 0x757   :  { %v1325_v30 = vmul.f32 %v1722_v49, %v1720_v29 }
 0x759   :  { %v1333_v50 = vpack.c.bf16 %v1325_v30, %v1325_v30 }
 0x75b   :  { %1367 = vmatmul.mubr.bf16.vlgmr.msra.gmra.mrb[44].mxu0 %v1333_v50  ;;  %1408 = vmatmul.mubr.bf16.vlgmr.msra.gmra.mrb[44].mxu1 %v1333_v50 }
 0x82e   :  { %v1368_v31 = vpop.f32.mrb[44].mxu0  ;;  %v1409_v18 = vpop.f32.mrb[44].mxu1 }
 0x82f   :  { %v1416_v32 = vadd.f32 %v1368_v31, %v2447_v19  ;;  %v1418_v34 = vadd.f32 %v1409_v18, %v2448_v33  ;;  %v1370_v36 = vpop.f32.mrb[45].mxu0  ;;  %v1411_v37 = vpop.f32.mrb[45].mxu1 }
 0x830   :  { %v1417_v39 = vadd.f32 %v1370_v36, %v2449_v38  ;;  %v1419_v58 = vadd.f32 %v1411_v37, %v2450_v44  ;;  %v1372_v60 = vpop.f32.mrb[46].mxu0  ;;  %v1413_v62 = vpop.f32.mrb[46].mxu1 }
 0x831   :  { %v1545_v61 = vmul.f32 -1.442695, %v1416_v32  ;;  %v1373_v1 = vpop.f32.mrb[47].mxu0  ;;  %v1414_v63 = vpop.f32.mrb[47].mxu1  ;;  %v1547_v2 = vmul.f32 -1.442695, %v1418_v34 }
 0x832   :  { %v1546_v0 = vmul.f32 -1.442695, %v1417_v39 }
 0x833   :  { %1723 = vpow2.f32 %v1545_v61 }
 0x834   :  { %1725 = vpow2.f32 %v1546_v0 }
 0x835   :  { %1727 = vtanh.f32 %v1419_v58 }
 0x836   :  { %1729 = vpow2.f32 %v1547_v2 }
 0x83d   :  { %v1724_v11 = vpop.eup %1723 }
 0x83e   :  { %v1429_v8 = vadd.f32 1.0, %v1724_v11  ;;  %v1726_v53 = vpop.eup %1725 }
 0x83f   :  { %v1430_v5 = vadd.f32 1.0, %v1726_v53  ;;  %v1728_v7 = vpop.eup %1727 }
 0x840   :  { %1731 = vrcp.f32 %v1429_v8  ;;  %v1730_v9 = vpop.eup %1729 }
 0x841   :  { %1733 = vrcp.f32 %v1430_v5  ;;  %v1431_v13 = vadd.f32 1.0, %v1730_v9 }
 0x843   :  { %1735 = vrcp.f32 %v1431_v13 }
 0x84a   :  { %v1732_v26 = vpop.eup %1731 }
 0x84b   :  { %v1440_v15 = vmul.f32 %v1732_v26, %v1728_v7  ;;  %v1734_v16 = vpop.eup %1733 }
 0x84c   :  { %v1439_v17 = vmul.f32 %v1734_v16, %v1323_v48 }
 0x84d   :  { %v1736_v10 = vpop.eup %1735 }
 0x84e   :  { %v1441_v35 = vadd.f32 %v1440_v15, %v1439_v17 }
 0x850   :  { %1737 = vtanh.f32 %v1441_v35 }
 0x85a   :  { %v1738_v6 = vpop.eup %1737 }
 0x85b   :  { %v1443_v3 = vmul.f32 %v1738_v6, %v1736_v10 }
 0x85d   :  { %v1451_v14 = vmul.f32 %v1548_v55, %v1443_v3 }
 0x85f   :  { %1452 = vadd.xlane.f32.xlu0 %v1451_v14 }
 0x8ec   :  { %v1453_v52 = vpop.xlane.xlu0 %1452 }
 0x8ed   :  { %v1461_v56 = vadd.f32 %v1549_v57, %v1453_v52 }
 0x8ef   :  { %1463 = vst.msk [vmem:[%s2405_s6] sm:$0xff] %vm1462_vm3, %v1461_v56 }
 0x8f0   :  { %1468 = vsyncpa [#allocation5], 1 }

</bundles_post_ra>
